<compile_context>
chip_gen: v7x
topology: tpu7x:2x2x1
jax: 0.10.0
libtpu: 0.0.40
codegen_flags: <defaults>
</compile_context>

<pallas_src>
import functools

import jax
import jax.numpy as jnp
from jax import lax
from jax.experimental import pallas as pl
from jax.experimental.pallas import tpu as pltpu


def _linear_attention_kernel(x_ref, wqkv_ref, memk_ref, memv_ref, wout_ref,
                             bout_ref, mask_ref, o_ref, *, heads, dim_head):
    hidden = heads * dim_head
    f32 = jnp.float32
    bf16 = jnp.bfloat16
    N = x_ref.shape[-1]

    x = x_ref[...]                                      # (C, N) f32

    # ---- RMSNorm.  The g * sqrt(C) gain is pre-folded into the wqkv columns,
    # so only the per-position 1/||x|| normalization remains here.
    ssq = jnp.sum(x * x, axis=0, keepdims=True)         # (1, N)
    xn = x * lax.rsqrt(jnp.maximum(ssq, 1e-24))         # == x / max(||x||, 1e-12)

    # ---- 1x1 qkv conv: one MXU matmul, bf16 operands, f32 accumulation.
    qkv = jnp.dot(wqkv_ref[...], xn.astype(bf16),
                  preferred_element_type=f32)           # (3*hidden, N)
    q = qkv[:hidden]                                    # (hidden, N)
    k = qkv[hidden:2 * hidden]                          # (hidden, N)
    v = qkv[2 * hidden:]                                # (hidden, N)

    # ---- q softmax over the head-dim axis.  A single global column max is a
    # valid shift for every head; the per-head denominators come from one
    # segmented reduction (no per-head where/select loop).
    qe = jnp.exp(q - jnp.max(q, axis=0, keepdims=True))             # (hidden, N)
    qe3 = qe.reshape(heads, dim_head, N)                            # layout-clean split
    qden = jnp.sum(qe3, axis=1, keepdims=True)                      # (heads, 1, N)
    q_sm = (qe3 * pl.reciprocal(qden, approx=True)).reshape(hidden, N)
    # dim_head**-0.5 q scale is folded into the block-diagonal ctx mask.

    # ---- k softmax over (mem ++ spatial), rows stacked across heads.
    mk = memk_ref[...]                                              # (hidden, M) f32
    mv = memv_ref[...]                                              # (hidden, M) f32
    kmax = jnp.maximum(jnp.max(k, axis=-1, keepdims=True),
                       jnp.max(mk, axis=-1, keepdims=True))         # (hidden, 1)
    ke = jnp.exp(k - kmax)                                          # (hidden, N)
    mke = jnp.exp(mk - kmax)                                        # (hidden, M)
    kinv = pl.reciprocal(jnp.sum(ke, axis=-1, keepdims=True)
                         + jnp.sum(mke, axis=-1, keepdims=True),
                         approx=True)                               # (hidden, 1)
    k_sm = ke * kinv
    mk_sm = mke * kinv

    # ---- stacked-heads context: one wide MXU matmul over N plus a tiny
    # matmul for the memory slots; cross-head blocks removed by the
    # precomputed block-diagonal mask (which carries the q scale).
    ctx = lax.dot_general(k_sm.astype(bf16), v.astype(bf16),
                          (((1,), (1,)), ((), ())),
                          preferred_element_type=f32)               # (hidden, hidden)
    ctx = ctx + lax.dot_general(mk_sm.astype(bf16), mv.astype(bf16),
                                (((1,), (1,)), ((), ())),
                                preferred_element_type=f32)
    ctx_m = ctx * mask_ref[...]                                     # f32, block-diag * scale

    # ---- reassociated tail: fold wout into the (hidden, hidden) context
    # first, then a single (C, hidden) @ (hidden, N) matmul.
    # w_ctx[c, d] = sum_e wout[c, e] * ctx_m[d, e]
    w_ctx = lax.dot_general(wout_ref[...], ctx_m.astype(bf16),
                            (((1,), (1,)), ((), ())),
                            preferred_element_type=f32)             # (C, hidden) f32
    y = jnp.dot(w_ctx.astype(bf16), q_sm.astype(bf16),
                preferred_element_type=f32) + bout_ref[...]         # (C, N)
    o_ref[...] = y.astype(o_ref.dtype)


def linear_attention_pallas(x, g, wqkv, mem_kv, wout, bout, *,
                            heads, dim_head):
    B, C, H, W = x.shape
    N = H * W
    hidden = heads * dim_head
    scale = dim_head ** -0.5

    xf = x.reshape(B, C, N)

    # One-time prep (constant-foldable under jit):
    #  - fold RMSNorm's g * sqrt(C) into the qkv weight columns,
    #  - cast MXU weight operands to bf16,
    #  - stack mem_kv heads into (hidden, M),
    #  - build the block-diagonal head mask with the q scale folded in.
    col_scale = g.reshape(1, C).astype(jnp.float32) * (C ** 0.5)
    wqkv_s = (wqkv.astype(jnp.float32) * col_scale).astype(jnp.bfloat16)
    wout_b = wout.astype(jnp.bfloat16)
    bout2 = bout.reshape(C, 1).astype(jnp.float32)
    mem_k = mem_kv[0].reshape(hidden, -1).astype(jnp.float32)
    mem_v = mem_kv[1].reshape(hidden, -1).astype(jnp.float32)
    M = mem_k.shape[-1]

    rb = jnp.arange(hidden, dtype=jnp.int32)[:, None] // dim_head
    cb = jnp.arange(hidden, dtype=jnp.int32)[None, :] // dim_head
    head_mask = jnp.where(rb == cb, jnp.float32(scale), jnp.float32(0.0))

    kernel = functools.partial(_linear_attention_kernel,
                               heads=heads, dim_head=dim_head)

    out = pl.pallas_call(
        kernel,
        out_shape=jax.ShapeDtypeStruct((B, C, N), x.dtype),
        grid=(B,),
        in_specs=[
            pl.BlockSpec((pl.Squeezed(), C, N), lambda b: (b, 0, 0)),  # x
            pl.BlockSpec((3 * hidden, C), lambda b: (0, 0)),           # W_qkv (scaled, bf16)
            pl.BlockSpec((hidden, M), lambda b: (0, 0)),               # mem_k stacked
            pl.BlockSpec((hidden, M), lambda b: (0, 0)),               # mem_v stacked
            pl.BlockSpec((C, hidden), lambda b: (0, 0)),               # W_out (bf16)
            pl.BlockSpec((C, 1), lambda b: (0, 0)),                    # b_out
            pl.BlockSpec((hidden, hidden), lambda b: (0, 0)),          # head mask * scale
        ],
        out_specs=pl.BlockSpec((pl.Squeezed(), C, N), lambda b: (b, 0, 0)),
        compiler_params=pltpu.CompilerParams(
            dimension_semantics=("parallel",)),
    )(xf, wqkv_s, mem_k, mem_v, wout_b, bout2, head_mask)

    return out.reshape(B, C, H, W)


def linear_attention_ref(x, g, wqkv, mem_kv, wout, bout, *, heads, dim_head):
    """Pure-JAX f32 reference matching the PyTorch forward exactly."""
    B, C, H, W = x.shape
    N = H * W
    hidden = heads * dim_head
    scale = dim_head ** -0.5

    xf = x.reshape(B, C, N)
    nrm = jnp.sqrt(jnp.sum(xf * xf, axis=1, keepdims=True))
    xn = xf / jnp.maximum(nrm, 1e-12) * g.reshape(1, C, 1) * (C ** 0.5)

    qkv = jnp.einsum('oc,bcn->bon', wqkv, xn)
    q = qkv[:, :hidden].reshape(B, heads, dim_head, N)
    k = qkv[:, hidden:2 * hidden].reshape(B, heads, dim_head, N)
    v = qkv[:, 2 * hidden:].reshape(B, heads, dim_head, N)

    mk = jnp.broadcast_to(mem_kv[0], (B,) + mem_kv[0].shape)
    mv = jnp.broadcast_to(mem_kv[1], (B,) + mem_kv[1].shape)
    k = jnp.concatenate([mk, k], axis=-1)
    v = jnp.concatenate([mv, v], axis=-1)

    q = jax.nn.softmax(q, axis=-2) * scale
    k = jax.nn.softmax(k, axis=-1)

    ctx = jnp.einsum('bhdn,bhen->bhde', k, v)
    out = jnp.einsum('bhde,bhdn->bhen', ctx, q).reshape(B, hidden, N)
    y = jnp.einsum('ch,bhn->bcn', wout, out) + bout.reshape(1, C, 1)
    return y.reshape(B, C, H, W)


if __name__ == "__main__":
    # Small deterministic config consistent with the module defaults:
    # dim=64, heads=4, dim_head=32 (hidden=128), num_mem_kv=4, 16x16 spatial
    # (N = 256 -> lane-dense blocks, multiple of 128).
    B, C, H, W = 2, 64, 16, 16
    heads, dim_head, num_mem_kv = 4, 32, 4
    hidden = heads * dim_head

    key = jax.random.PRNGKey(0)
    kx, kg, kmem, kqkv, kwo, kbo = jax.random.split(key, 6)

    x = jax.random.normal(kx, (B, C, H, W), dtype=jnp.float32)

    # Parameters (deterministic synthetic init; shapes follow the nn.Module).
    # g is made non-trivial so the wqkv-folding of RMSNorm's gain is exercised.
    g = 1.0 + 0.1 * jax.random.normal(kg, (1, C, 1, 1), dtype=jnp.float32)
    mem_kv = jax.random.normal(kmem, (2, heads, dim_head, num_mem_kv),
                               dtype=jnp.float32)
    wqkv = 0.1 * jax.random.normal(kqkv, (3 * hidden, C), dtype=jnp.float32)
    wout = 0.1 * jax.random.normal(kwo, (C, hidden), dtype=jnp.float32)
    bout = 0.1 * jax.random.normal(kbo, (C,), dtype=jnp.float32)

    y = linear_attention_pallas(x, g, wqkv, mem_kv, wout, bout,
                                heads=heads, dim_head=dim_head)
    y = jax.block_until_ready(y)

    y_ref = linear_attention_ref(x, g, wqkv, mem_kv, wout, bout,
                                 heads=heads, dim_head=dim_head)
    assert y.shape == (B, C, H, W)
    # Tolerance accounts for bf16 MXU operands (f32 accumulation) and the
    # approximate EUP reciprocal in the softmax denominators.
    assert jnp.allclose(y, y_ref, atol=1e-2, rtol=1e-2), "mismatch vs reference"

    print("KERNEL_OK")
</pallas_src>

<mosaic_0001>
module attributes {stable_mosaic.version = 11 : i64} {
  func.func @_linear_attention_kernel(%arg0: i32, %arg1: memref<1x64x256xf32, #tpu.memory_space<vmem>>, %arg2: memref<384x64xbf16, #tpu.memory_space<vmem>>, %arg3: memref<128x4xf32, #tpu.memory_space<vmem>>, %arg4: memref<128x4xf32, #tpu.memory_space<vmem>>, %arg5: memref<64x128xbf16, #tpu.memory_space<vmem>>, %arg6: memref<64x1xf32, #tpu.memory_space<vmem>>, %arg7: memref<128x128xf32, #tpu.memory_space<vmem>>, %arg8: memref<1x64x256xf32, #tpu.memory_space<vmem>>) attributes {dimension_semantics = [#tpu.dimension_semantics<parallel>], iteration_bounds = array<i64: 2>, scalar_prefetch = 0 : i64, scratch_operands = 0 : i64, tpu.core_type = #tpu.core_type<tc>, window_params = [{transform_indices = @transform_0, window_bounds = array<i64: 1, 64, 256>}, {pipeline_mode = #tpu.pipeline_mode<synchronous>, transform_indices = @transform_1, window_bounds = array<i64: 384, 64>}, {pipeline_mode = #tpu.pipeline_mode<synchronous>, transform_indices = @transform_2, window_bounds = array<i64: 128, 4>}, {pipeline_mode = #tpu.pipeline_mode<synchronous>, transform_indices = @transform_3, window_bounds = array<i64: 128, 4>}, {pipeline_mode = #tpu.pipeline_mode<synchronous>, transform_indices = @transform_4, window_bounds = array<i64: 64, 128>}, {pipeline_mode = #tpu.pipeline_mode<synchronous>, transform_indices = @transform_5, window_bounds = array<i64: 64, 1>}, {pipeline_mode = #tpu.pipeline_mode<synchronous>, transform_indices = @transform_6, window_bounds = array<i64: 128, 128>}, {transform_indices = @transform_7, window_bounds = array<i64: 1, 64, 256>}]} {
    %c0 = arith.constant 0 : index
    %c0_0 = arith.constant 0 : index
    %c0_1 = arith.constant 0 : index
    %0 = vector.load %arg1[%c0, %c0_0, %c0_1] : memref<1x64x256xf32, #tpu.memory_space<vmem>>, vector<1x64x256xf32>
    %1 = vector.shape_cast %0 : vector<1x64x256xf32> to vector<64x256xf32>
    %2 = arith.mulf %1, %1 : vector<64x256xf32>
    %cst = arith.constant dense<0.000000e+00> : vector<256xf32>
    %3 = vector.multi_reduction <add>, %2, %cst [0] : vector<64x256xf32> to vector<256xf32>
    %4 = vector.shape_cast %3 : vector<256xf32> to vector<1x256xf32>
    %cst_2 = arith.constant 1.000000e-24 : f32
    %5 = vector.broadcast %cst_2 : f32 to vector<1x256xf32>
    %6 = arith.maximumf %4, %5 : vector<1x256xf32>
    %7 = math.rsqrt %6 : vector<1x256xf32>
    %8 = vector.broadcast %7 : vector<1x256xf32> to vector<64x256xf32>
    %9 = arith.mulf %1, %8 : vector<64x256xf32>
    %c0_3 = arith.constant 0 : index
    %c0_4 = arith.constant 0 : index
    %10 = vector.load %arg2[%c0_3, %c0_4] : memref<384x64xbf16, #tpu.memory_space<vmem>>, vector<384x64xbf16>
    %11 = arith.truncf %9 : vector<64x256xf32> to vector<64x256xbf16>
    %cst_5 = arith.constant dense<0.000000e+00> : vector<384x256xf32>
    %12 = tpu.matmul %10, %11, %cst_5 {dimension_numbers = #tpu.dot_dimension_numbers<[1], [0], [0], [1], [0, 0, 1, 1], [], []>} : vector<384x64xbf16>, vector<64x256xbf16>, vector<384x256xf32> -> vector<384x256xf32>
    %13 = vector.extract_strided_slice %12 {offsets = [0, 0], sizes = [128, 256], strides = [1, 1]} : vector<384x256xf32> to vector<128x256xf32>
    %14 = vector.extract_strided_slice %12 {offsets = [128, 0], sizes = [128, 256], strides = [1, 1]} : vector<384x256xf32> to vector<128x256xf32>
    %15 = vector.extract_strided_slice %12 {offsets = [256, 0], sizes = [128, 256], strides = [1, 1]} : vector<384x256xf32> to vector<128x256xf32>
    %cst_6 = arith.constant dense<0xFF800000> : vector<256xf32>
    %16 = vector.multi_reduction <maximumf>, %13, %cst_6 [0] : vector<128x256xf32> to vector<256xf32>
    %17 = vector.shape_cast %16 : vector<256xf32> to vector<1x256xf32>
    %18 = vector.broadcast %17 : vector<1x256xf32> to vector<128x256xf32>
    %19 = arith.subf %13, %18 : vector<128x256xf32>
    %20 = math.exp %19 : vector<128x256xf32>
    %21 = vector.shape_cast %20 : vector<128x256xf32> to vector<4x32x256xf32>
    %cst_7 = arith.constant dense<0.000000e+00> : vector<4x256xf32>
    %22 = vector.multi_reduction <add>, %21, %cst_7 [1] : vector<4x32x256xf32> to vector<4x256xf32>
    %23 = vector.shape_cast %22 : vector<4x256xf32> to vector<4x1x256xf32>
    %24 = tpu.reciprocal %23 {approx = true} : vector<4x1x256xf32> -> vector<4x1x256xf32>
    %25 = vector.broadcast %24 : vector<4x1x256xf32> to vector<4x32x256xf32>
    %26 = arith.mulf %21, %25 : vector<4x32x256xf32>
    %27 = vector.shape_cast %26 : vector<4x32x256xf32> to vector<128x256xf32>
    %c0_8 = arith.constant 0 : index
    %c0_9 = arith.constant 0 : index
    %28 = vector.load %arg3[%c0_8, %c0_9] : memref<128x4xf32, #tpu.memory_space<vmem>>, vector<128x4xf32>
    %c0_10 = arith.constant 0 : index
    %c0_11 = arith.constant 0 : index
    %29 = vector.load %arg4[%c0_10, %c0_11] : memref<128x4xf32, #tpu.memory_space<vmem>>, vector<128x4xf32>
    %cst_12 = arith.constant dense<0xFF800000> : vector<128xf32>
    %30 = vector.multi_reduction <maximumf>, %14, %cst_12 [1] : vector<128x256xf32> to vector<128xf32>
    %31 = vector.shape_cast %30 : vector<128xf32> to vector<128x1xf32>
    %cst_13 = arith.constant dense<0xFF800000> : vector<128xf32>
    %32 = vector.multi_reduction <maximumf>, %28, %cst_13 [1] : vector<128x4xf32> to vector<128xf32>
    %33 = vector.shape_cast %32 : vector<128xf32> to vector<128x1xf32>
    %34 = arith.maximumf %31, %33 : vector<128x1xf32>
    %35 = vector.broadcast %34 : vector<128x1xf32> to vector<128x256xf32>
    %36 = arith.subf %14, %35 : vector<128x256xf32>
    %37 = math.exp %36 : vector<128x256xf32>
    %38 = vector.broadcast %34 : vector<128x1xf32> to vector<128x4xf32>
    %39 = arith.subf %28, %38 : vector<128x4xf32>
    %40 = math.exp %39 : vector<128x4xf32>
    %cst_14 = arith.constant dense<0.000000e+00> : vector<128xf32>
    %41 = vector.multi_reduction <add>, %37, %cst_14 [1] : vector<128x256xf32> to vector<128xf32>
    %42 = vector.shape_cast %41 : vector<128xf32> to vector<128x1xf32>
    %cst_15 = arith.constant dense<0.000000e+00> : vector<128xf32>
    %43 = vector.multi_reduction <add>, %40, %cst_15 [1] : vector<128x4xf32> to vector<128xf32>
    %44 = vector.shape_cast %43 : vector<128xf32> to vector<128x1xf32>
    %45 = arith.addf %42, %44 : vector<128x1xf32>
    %46 = tpu.reciprocal %45 {approx = true} : vector<128x1xf32> -> vector<128x1xf32>
    %47 = vector.broadcast %46 : vector<128x1xf32> to vector<128x256xf32>
    %48 = arith.mulf %37, %47 : vector<128x256xf32>
    %49 = vector.broadcast %46 : vector<128x1xf32> to vector<128x4xf32>
    %50 = arith.mulf %40, %49 : vector<128x4xf32>
    %51 = arith.truncf %48 : vector<128x256xf32> to vector<128x256xbf16>
    %52 = arith.truncf %15 : vector<128x256xf32> to vector<128x256xbf16>
    %cst_16 = arith.constant dense<0.000000e+00> : vector<128x128xf32>
    %53 = tpu.matmul %51, %52, %cst_16 {dimension_numbers = #tpu.dot_dimension_numbers<[1], [1], [0], [0], [0, 0, 1, 0], [], []>} : vector<128x256xbf16>, vector<128x256xbf16>, vector<128x128xf32> -> vector<128x128xf32>
    %54 = arith.truncf %50 : vector<128x4xf32> to vector<128x4xbf16>
    %55 = arith.truncf %29 : vector<128x4xf32> to vector<128x4xbf16>
    %cst_17 = arith.constant dense<0.000000e+00> : vector<128x128xf32>
    %56 = tpu.matmul %54, %55, %cst_17 {dimension_numbers = #tpu.dot_dimension_numbers<[1], [1], [0], [0], [0, 0, 1, 0], [], []>} : vector<128x4xbf16>, vector<128x4xbf16>, vector<128x128xf32> -> vector<128x128xf32>
    %57 = arith.addf %53, %56 : vector<128x128xf32>
    %c0_18 = arith.constant 0 : index
    %c0_19 = arith.constant 0 : index
    %58 = vector.load %arg7[%c0_18, %c0_19] : memref<128x128xf32, #tpu.memory_space<vmem>>, vector<128x128xf32>
    %59 = arith.mulf %57, %58 : vector<128x128xf32>
    %c0_20 = arith.constant 0 : index
    %c0_21 = arith.constant 0 : index
    %60 = vector.load %arg5[%c0_20, %c0_21] : memref<64x128xbf16, #tpu.memory_space<vmem>>, vector<64x128xbf16>
    %61 = arith.truncf %59 : vector<128x128xf32> to vector<128x128xbf16>
    %cst_22 = arith.constant dense<0.000000e+00> : vector<64x128xf32>
    %62 = tpu.matmul %60, %61, %cst_22 {dimension_numbers = #tpu.dot_dimension_numbers<[1], [1], [0], [0], [0, 0, 1, 0], [], []>} : vector<64x128xbf16>, vector<128x128xbf16>, vector<64x128xf32> -> vector<64x128xf32>
    %63 = arith.truncf %62 : vector<64x128xf32> to vector<64x128xbf16>
    %64 = arith.truncf %27 : vector<128x256xf32> to vector<128x256xbf16>
    %cst_23 = arith.constant dense<0.000000e+00> : vector<64x256xf32>
    %65 = tpu.matmul %63, %64, %cst_23 {dimension_numbers = #tpu.dot_dimension_numbers<[1], [0], [0], [1], [0, 0, 1, 1], [], []>} : vector<64x128xbf16>, vector<128x256xbf16>, vector<64x256xf32> -> vector<64x256xf32>
    %c0_24 = arith.constant 0 : index
    %c0_25 = arith.constant 0 : index
    %66 = vector.load %arg6[%c0_24, %c0_25] : memref<64x1xf32, #tpu.memory_space<vmem>>, vector<64x1xf32>
    %67 = vector.broadcast %66 : vector<64x1xf32> to vector<64x256xf32>
    %68 = arith.addf %65, %67 : vector<64x256xf32>
    %c0_26 = arith.constant 0 : index
    %c0_27 = arith.constant 0 : index
    %c0_28 = arith.constant 0 : index
    %69 = vector.load %arg8[%c0_26, %c0_27, %c0_28] : memref<1x64x256xf32, #tpu.memory_space<vmem>>, vector<1x64x256xf32>
    %70 = vector.shape_cast %69 : vector<1x64x256xf32> to vector<64x256xf32>
    %71 = vector.shape_cast %68 : vector<64x256xf32> to vector<1x64x256xf32>
    tpu.vector_store %arg8[%c0_26, %c0_27, %c0_28], %71 {strides = array<i32>} : memref<1x64x256xf32, #tpu.memory_space<vmem>>, vector<1x64x256xf32>,
    return
  }
  func.func @transform_0(%arg0: i32) -> (i32, i32, i32) {
    %c0_i32 = arith.constant 0 : i32
    %c0_i32_0 = arith.constant 0 : i32
    %c0_i32_1 = arith.constant 0 : i32
    return %arg0, %c0_i32, %c0_i32_0 : i32, i32, i32
  }
  func.func @transform_1(%arg0: i32) -> (i32, i32) {
    %c0_i32 = arith.constant 0 : i32
    %c0_i32_0 = arith.constant 0 : i32
    %c0_i32_1 = arith.constant 0 : i32
    return %c0_i32, %c0_i32_0 : i32, i32
  }
  func.func @transform_2(%arg0: i32) -> (i32, i32) {
    %c0_i32 = arith.constant 0 : i32
    %c0_i32_0 = arith.constant 0 : i32
    %c0_i32_1 = arith.constant 0 : i32
    return %c0_i32, %c0_i32_0 : i32, i32
  }
  func.func @transform_3(%arg0: i32) -> (i32, i32) {
    %c0_i32 = arith.constant 0 : i32
    %c0_i32_0 = arith.constant 0 : i32
    %c0_i32_1 = arith.constant 0 : i32
    return %c0_i32, %c0_i32_0 : i32, i32
  }
  func.func @transform_4(%arg0: i32) -> (i32, i32) {
    %c0_i32 = arith.constant 0 : i32
    %c0_i32_0 = arith.constant 0 : i32
    %c0_i32_1 = arith.constant 0 : i32
    return %c0_i32, %c0_i32_0 : i32, i32
  }
  func.func @transform_5(%arg0: i32) -> (i32, i32) {
    %c0_i32 = arith.constant 0 : i32
    %c0_i32_0 = arith.constant 0 : i32
    %c0_i32_1 = arith.constant 0 : i32
    return %c0_i32, %c0_i32_0 : i32, i32
  }
  func.func @transform_6(%arg0: i32) -> (i32, i32) {
    %c0_i32 = arith.constant 0 : i32
    %c0_i32_0 = arith.constant 0 : i32
    %c0_i32_1 = arith.constant 0 : i32
    return %c0_i32, %c0_i32_0 : i32, i32
  }
  func.func @transform_7(%arg0: i32) -> (i32, i32, i32) {
    %c0_i32 = arith.constant 0 : i32
    %c0_i32_0 = arith.constant 0 : i32
    %c0_i32_1 = arith.constant 0 : i32
    return %arg0, %c0_i32, %c0_i32_0 : i32, i32, i32
  }
}

</mosaic_0001>

<bundles_post_ra>
// kernel: tpu_custom_call.1
= control target key start
LH: loop header
LB: loop body
LE: loop exit
PB: predicated region body
PF: predicated region fallthrough
CT: control target
= control target key end

     0   :  { %12 = vsyncpa [#allocation3], 0  ;;  %s4428_s0 = inlined_call_operand.vmem [shape: f32[2,64,256], index: 0, kind: input, shape index: {}]   ;;  %s4429_s1 = inlined_call_operand.vmem [shape: bf16[384,64], index: 1, kind: input, shape index: {}]   ;;  %s4430_s2 = inlined_call_operand.vmem [shape: f32[128,4], index: 2, kind: input, shape index: {}]   ;;  %s4431_s3 = inlined_call_operand.vmem [shape: f32[128,4], index: 3, kind: input, shape index: {}]   ;;  %s4432_s4 = inlined_call_operand.vmem [shape: bf16[64,128], index: 4, kind: input, shape index: {}]   ;;  %s4433_s5 = inlined_call_operand.vmem [shape: f32[64,1], index: 5, kind: input, shape index: {}]   ;;  %s4434_s6 = inlined_call_operand.vmem [shape: f32[128,128], index: 6, kind: input, shape index: {}]   ;;  %s4435_s7 = inlined_call_operand.hbm [shape: f32[2,64,256], index: 7, kind: output, shape index: {}]  }
   0x1   :  { %14 = vsyncpa [#allocation3 + $0x1], 0  ;;  %s2837_s24 = smov 0   ;;  %s2839_s25 = smov 0  }
   0x2   :  { %s2841_s26 = smov 0   ;;  %s2843_s27 = smov 0  }
   0x3 LB: > { %s2858_s28 = sadd.s32 4294967295, %s2791_s27   ;;  %s2253_s29 = sadd.s32 4294967294, %s2791_s27   ;;  %s2791_s27 = sphi %s2843_s27, %s4674_s27   ;;  %s2787_s26 = sphi %s2841_s26, %s4673_s26   ;;  %s2783_s25 = sphi %s2839_s25, %s4672_s25   ;;  %s2779_s24 = sphi %s2837_s24, %s4671_s24  }
   0x4   : > { %s2862_s30 = sadd.s32 1, %s2791_s27   ;;  %s179_s8 = sadd.s32 1, %s2787_s26 }
   0x5   : > { %s176_s9 = ssub.s32 %s2791_s27, %s2862_s30  ;;  %p189_p0 = scmp.ne.s32.totalorder %s2787_s26, %s2783_s25 }
   0x6   : > { %p177_p1 = scmp.eq.s32.totalorder %s176_s9, 0  ;;  %p190_p2 = scmp.eq.s32.totalorder %s2858_s28, 1 }
   0x7   : > { %p195_p3 = scmp.ne.s32.totalorder %s2783_s25, %s2779_s24  ;;  %p196_p4 = scmp.eq.s32.totalorder %s2253_s29, 1 }
   0x8   : > { %s2873_s10 = scalar_select %p177_p1, %s2787_s26, %s179_s8  }
   0x9   : > { %p2875_p5 = por %p190_p2, %p189_p0  ;;  %p2879_p6 = por %p196_p4, %p195_p3 }
   0xa   : > { %p2256_p7 = scmp.ge.s32.totalorder %s2791_s27, 1  ;;  %p240_p8 = scmp.lt.s32.totalorder %s2791_s27, 3 }
   0xc   : > { %p241_p9 = pnand %p2256_p7, %p240_p8 }
   0xe   : > { %244 = sbr.rel (%p241_p9) target bundleno = 1527 (0x5f7), region = 48 }
  0x15   : > { %p272_p10 = scmp.lt.s32.totalorder %s2858_s28, 1  ;;  %v4436_v0 = vmov 0   ;;  %vm532_vm0 = vcmask 523264   ;;  %vm1208_vm1 = vcmask 31744   ;;  %s269_s29 = sand.u32 1, %s2783_s25  }
  0x16   : > { %637 = vmatprep.mubr.bf16.mxu0 %v4436_v0  ;;  %2478 = vset.pattern.permute.xlu1 %v4436_v0  ;;  %s2257_s8 = sshll.u32 %s269_s29, 7  ;;  %s2794_s19 = smov [#allocation2]  }
  0x17   : > { %s273_s13 = scalar_select %p272_p10, %s2858_s28, 1  ;;  %2477 = vset.pattern.permute.xlu0 %v4436_v0 }
  0x18   : > { %s4358_s9 = scalar_lea.vmem [#allocation2], %s2257_s8  ;;  %s2733_s20 = sshll.u32 %s2794_s19, 4  ;;  %s2734_s20 = int_to_ptr.vmem [resolvable:$false] %s2733_s20 }
  0x19   : > { %s2325_s14 = sshll.u32 %s273_s13, 7  ;;  %s2326_s13 = sshll.u32 %s2858_s28, 11 }
  0x1a   : > { %s2893_s17 = scalar_lea.vmem %s4428_s0, %s2325_s14  ;;  %s2191_s14 = sshll.u32 %s4358_s9, 4  ;;  %s4380_s14 = int_to_ptr.vmem [resolvable:$true] %s2191_s14 }
  0x1b   : > { %v2896_v1 = vld [vmem:[%s2893_s17 + $0x8] sm:$0xff]  ;;  %v2899_v2 = vld [vmem:[%s2893_s17 + $0x18] sm:$0xff]  ;;  %v278_v9 = vld [vmem:[%s2893_s17] sm:$0xff]  ;;  %s4387_s28 = scalar_lea.sflag [#allocation3], %s269_s29  ;;  %s2729_s18 = scalar_lea.vmem %s4380_s14, 2048 }
  0x1c   : > { %v2902_v3 = vld [vmem:[%s2893_s17 + $0x28] sm:$0xff]  ;;  %v2905_v4 = vld [vmem:[%s2893_s17 + $0x38] sm:$0xff]  ;;  %v295_v5 = vmul.f32 %v2896_v1, %v2896_v1  ;;  %v297_v6 = vmul.f32 %v2899_v2, %v2899_v2  ;;  %v280_v12 = vld [vmem:[%s2893_s17 + $0x10] sm:$0xff]  ;;  %v294_v15 = vmul.f32 %v278_v9, %v278_v9  ;;  %p2730_p11 = scmp.ne.s32.totalorder %s4380_s14, %s2729_s18  ;;  %s2735_s21 = scalar_lea.vmem %s2734_s20, 4096 }
  0x1d   : > { %v299_v7 = vmul.f32 %v2902_v3, %v2902_v3  ;;  %v2914_v8 = vld [vmem:[%s2893_s17 + $0x48] sm:$0xff]  ;;  %v301_v10 = vmul.f32 %v2905_v4, %v2905_v4  ;;  %v282_v13 = vld [vmem:[%s2893_s17 + $0x20] sm:$0xff]  ;;  %v284_v14 = vld [vmem:[%s2893_s17 + $0x30] sm:$0xff]  ;;  %v296_v17 = vmul.f32 %v280_v12, %v280_v12  ;;  %p2736_p0 = scmp.lt.s32.totalorder %s4380_s14, %s2734_s20  ;;  %p2737_p1 = scmp.lt.s32.totalorder %s2735_s21, %s2729_s18 }
  0x1e   : > { %v323_v11 = vadd.f32 %v297_v6, %v295_v5  ;;  %v289_v16 = vld [vmem:[%s2893_s17 + $0x58] sm:$0xff]  ;;  %v298_v18 = vmul.f32 %v282_v13, %v282_v13  ;;  %v303_v19 = vmul.f32 %v2914_v8, %v2914_v8  ;;  %v286_v21 = vld [vmem:[%s2893_s17 + $0x40] sm:$0xff]  ;;  %v2927_v22 = vld [vmem:[%s2893_s17 + $0x68] sm:$0xff]  ;;  %v300_v23 = vmul.f32 %v284_v14, %v284_v14  ;;  %p2731_p12 = pnand %p2730_p11, %p2875_p5 }
  0x1f   : > { %v310_v24 = vadd.f32 %v296_v17, %v294_v15  ;;  %v305_v25 = vmul.f32 %v289_v16, %v289_v16  ;;  %v288_v27 = vld [vmem:[%s2893_s17 + $0x50] sm:$0xff]  ;;  %v293_v28 = vld [vmem:[%s2893_s17 + $0x78] sm:$0xff]  ;;  %v302_v29 = vmul.f32 %v286_v21, %v286_v21  ;;  %v307_v31 = vmul.f32 %v2927_v22, %v2927_v22  ;;  %v290_v33 = vld [vmem:[%s2893_s17 + $0x60] sm:$0xff]  ;;  %p2738_p2 = por %p2737_p1, %p2736_p0 }
  0x20   : > { %v324_v20 = vadd.f32 %v323_v11, %v299_v7  ;;  %v292_v34 = vld [vmem:[%s2893_s17 + $0x70] sm:$0xff]  ;;  %v304_v35 = vmul.f32 %v288_v27, %v288_v27  ;;  %v309_v37 = vmul.f32 %v293_v28, %v293_v28  ;;  %v306_v39 = vmul.f32 %v290_v33, %v290_v33  ;;  %s4378_s17 = scalar_lea.hbm %s4435_s7, %s2326_s13  ;;  %p2732_p13 = pneg %p2731_p12 }
  0x21   : > { %v311_v30 = vadd.f32 %v310_v24, %v298_v18  ;;  %v308_v42 = vmul.f32 %v292_v34, %v292_v34 }
  0x22   : > { %v325_v26 = vadd.f32 %v324_v20, %v301_v10  ;;  %p2739_p3 = pnand %p2738_p2, %p2732_p13 }
  0x23   : > { %v312_v36 = vadd.f32 %v311_v30, %v300_v23  ;;  %v2485_v30 = vld [vmem:[%s4429_s1 + $0x30] sm:$0xff]  }
  0x24   : > { %v326_v32 = vadd.f32 %v325_v26, %v303_v19 }
  0x25   : > { %v313_v40 = vadd.f32 %v312_v36, %v302_v29  ;;  %v2491_v36 = vld [vmem:[%s4429_s1 + $0x60] sm:$0xff]  }
  0x26   : > { %v327_v38 = vadd.f32 %v326_v32, %v305_v25  ;;  %v2487_v32 = vld [vmem:[%s4429_s1 + $0x40] sm:$0xff]  }
  0x27   : > { %v314_v43 = vadd.f32 %v313_v40, %v304_v35  ;;  %v2490_v35 = vld [vmem:[%s4429_s1 + $0x58] sm:$0xff]   ;;  %v1128_v40 = vld [vmem:[%s4430_s2] sm:$0xff] }
  0x28   : > { %v328_v41 = vadd.f32 %v327_v38, %v307_v31  ;;  %v2486_v31 = vld [vmem:[%s4429_s1 + $0x38] sm:$0xff]   ;;  %v2493_v38 = vld [vmem:[%s4429_s1 + $0x70] sm:$0xff]  }
  0x29   : > { %v315_v45 = vadd.f32 %v314_v43, %v306_v39  ;;  %v2494_v39 = vld [vmem:[%s4429_s1 + $0x78] sm:$0xff]  }
  0x2a   : > { %v329_v44 = vadd.f32 %v328_v41, %v309_v37  ;;  %v2492_v37 = vld [vmem:[%s4429_s1 + $0x68] sm:$0xff]   ;;  %v1209_v41 = vsel %vm1208_vm1, %v1128_v40, -inf  ;;  %v2497_v40 = vld [vmem:[%s4429_s1 + $0x90] sm:$0xff]  }
  0x2b   : > { %v316_v47 = vadd.f32 %v315_v45, %v308_v42  ;;  %1210 = vmax.xlane.f32.xlu1 %v1209_v41  ;;  %v1129_v42 = vld [vmem:[%s4430_s2 + $0x8] sm:$0xff] }
  0x2c   : > { %v330_v46 = vrot.slane %v329_v44, 4  ;;  %v1212_v43 = vsel %vm1208_vm1, %v1129_v42, -inf }
  0x2d   : > { %v317_v49 = vrot.slane %v316_v47, 4 }
  0x2e   : > { %v331_v48 = vadd.f32 %v330_v46, %v329_v44 }
  0x2f   : > { %v318_v51 = vadd.f32 %v317_v49, %v316_v47  ;;  %1213 = vmax.xlane.f32.xlu1 %v1212_v43 }
  0x30   : > { %v332_v50 = vrot.slane %v331_v48, 2 }
  0x31   : > { %v319_v53 = vrot.slane %v318_v51, 2 }
  0x32   : > { %v333_v52 = vadd.f32 %v332_v50, %v331_v48 }
  0x33   : > { %v320_v55 = vadd.f32 %v319_v53, %v318_v51 }
  0x34   : > { %v334_v54 = vrot.slane %v333_v52, 1 }
  0x35   : > { %v321_v57 = vrot.slane %v320_v55, 1 }
  0x36   : > { %v335_v56 = vadd.f32 %v334_v54, %v333_v52 }
  0x37   : > { %v322_v59 = vadd.f32 %v321_v57, %v320_v55 }
  0x38   : > { %v337_v58 = vmax.f32 %v335_v56, 1e-24 }
  0x39   : > { %v336_v60 = vmax.f32 %v322_v59, 1e-24 }
  0x3a   : > { %2507 = vrsqrt.f32 %v337_v58 }
  0x3b   : > { %2509 = vrsqrt.f32 %v336_v60 }
  0x44   : > { %v2508_v61 = vpop.eup %2507 }
  0x45   : > { %v341_v62 = vmul.f32 %v2508_v61, %v2896_v1  ;;  %v343_v63 = vmul.f32 %v2508_v61, %v2899_v2  ;;  %v345_v5 = vmul.f32 %v2508_v61, %v2902_v3  ;;  %v347_v6 = vmul.f32 %v2508_v61, %v2905_v4  ;;  %v2510_v7 = vpop.eup %2509 }
  0x46   : > { %v340_v11 = vmul.f32 %v2510_v7, %v278_v9  ;;  %v342_v15 = vmul.f32 %v2510_v7, %v280_v12  ;;  %v344_v17 = vmul.f32 %v2510_v7, %v282_v13  ;;  %v346_v18 = vmul.f32 %v2510_v7, %v284_v14 }
  0x47   : > { %v405_v10 = vpack.c.bf16 %v343_v63, %v341_v62  ;;  %v407_v19 = vpack.c.bf16 %v347_v6, %v345_v5  ;;  %v349_v20 = vmul.f32 %v2508_v61, %v2914_v8  ;;  %v351_v23 = vmul.f32 %v2508_v61, %v289_v16  ;;  %v2479_v8 = vld [vmem:[%s4429_s1] sm:$0xff]   ;;  %v2480_v16 = vld [vmem:[%s4429_s1 + $0x8] sm:$0xff]  }
  0x48   : > { %v404_v24 = vpack.c.bf16 %v342_v15, %v340_v11  ;;  %v406_v1 = vpack.c.bf16 %v346_v18, %v344_v17  ;;  %v348_v25 = vmul.f32 %v2510_v7, %v286_v21  ;;  %v350_v2 = vmul.f32 %v2510_v7, %v288_v27  ;;  %v2481_v21 = vld [vmem:[%s4429_s1 + $0x10] sm:$0xff]   ;;  %v2483_v27 = vld [vmem:[%s4429_s1 + $0x20] sm:$0xff]  }
  0x49   : > { %605 = vmatprep.subr.bf16.mxu0 %v405_v10  ;;  %v409_v3 = vpack.c.bf16 %v351_v23, %v349_v20  ;;  %v353_v4 = vmul.f32 %v2508_v61, %v2927_v22  ;;  %v355_v26 = vmul.f32 %v2508_v61, %v293_v28  ;;  %v352_v12 = vmul.f32 %v2510_v7, %v290_v33  ;;  %v2482_v22 = vld [vmem:[%s4429_s1 + $0x18] sm:$0xff]   ;;  %v2484_v28 = vld [vmem:[%s4429_s1 + $0x28] sm:$0xff]  }
  0x4a   : > { %606 = vmatpush1.bf16.msra.mxu0 %v404_v24  ;;  %v408_v9 = vpack.c.bf16 %v350_v2, %v348_v25  ;;  %v354_v13 = vmul.f32 %v2510_v7, %v292_v34  ;;  %v2488_v33 = vld [vmem:[%s4429_s1 + $0x48] sm:$0xff]   ;;  %v2489_v34 = vld [vmem:[%s4429_s1 + $0x50] sm:$0xff]  }
  0x4b   : > { %607 = vmatprep.subr.bf16.mxu0 %v407_v19  ;;  %v411_v14 = vpack.c.bf16 %v355_v26, %v353_v4 }
  0x4c   : > { %v410_v29 = vpack.c.bf16 %v354_v13, %v352_v12 }
  0x4e   : > { %608 = vmatpush1.bf16.msra.mxu0 %v406_v1 }
  0x4f   : > { %609 = vmatprep.subr.bf16.mxu0 %v409_v3 }
  0x52   : > { %610 = vmatpush1.bf16.msra.mxu0 %v408_v9 }
  0x53   : > { %611 = vmatprep.subr.bf16.mxu0 %v411_v14 }
  0x56   : > { %612 = vmatpush1.bf16.msra.mxu0 %v410_v29 }
  0x59   : > { %2284 = vmatmul.mubr.msk.bf16.vlgmr.msra.gmra.mrb[0].mxu0 %vm532_vm0, %v2479_v8 }
  0x5a   : > { %647 = vmatprep.mubr.bf16.mxu0 %v4436_v0 }
  0x61   : > { %2285 = vmatmul.mubr.msk.bf16.gmra.mrb[4].mxu0 %vm532_vm0, %v2480_v16  ;;  %v2495_v16 = vld [vmem:[%s4429_s1 + $0x80] sm:$0xff]  }
  0x62   : > { %657 = vmatprep.mubr.bf16.mxu0 %v4436_v0 }
  0x69   : > { %2286 = vmatmul.mubr.msk.bf16.gmra.mrb[8].mxu0 %vm532_vm0, %v2481_v21 }
  0x6a   : > { %667 = vmatprep.mubr.bf16.mxu0 %v4436_v0 }
  0x71   : > { %2287 = vmatmul.mubr.msk.bf16.gmra.mrb[12].mxu0 %vm532_vm0, %v2482_v22 }
  0x72   : > { %677 = vmatprep.mubr.bf16.mxu0 %v4436_v0 }
  0x79   : > { %2288 = vmatmul.mubr.msk.bf16.gmra.mrb[16].mxu0 %vm532_vm0, %v2483_v27 }
  0x7a   : > { %687 = vmatprep.mubr.bf16.mxu0 %v4436_v0 }
  0x81   : > { %2289 = vmatmul.mubr.msk.bf16.gmra.mrb[20].mxu0 %vm532_vm0, %v2484_v28 }
  0x82   : > { %697 = vmatprep.mubr.bf16.mxu0 %v4436_v0 }
  0x89   : > { %2290 = vmatmul.mubr.msk.bf16.gmra.mrb[24].mxu0 %vm532_vm0, %v2485_v30 }
  0x8a   : > { %707 = vmatprep.mubr.bf16.mxu0 %v4436_v0 }
  0x91   : > { %2291 = vmatmul.mubr.msk.bf16.gmra.mrb[28].mxu0 %vm532_vm0, %v2486_v31  ;;  %v2496_v31 = vld [vmem:[%s4429_s1 + $0x88] sm:$0xff]  }
  0x92   : > { %717 = vmatprep.mubr.bf16.mxu0 %v4436_v0 }
  0x99   : > { %2292 = vmatmul.mubr.msk.bf16.gmra.mrb[32].mxu0 %vm532_vm0, %v2487_v32 }
  0x9a   : > { %727 = vmatprep.mubr.bf16.mxu0 %v4436_v0 }
  0xa1   : > { %2293 = vmatmul.mubr.msk.bf16.gmra.mrb[36].mxu0 %vm532_vm0, %v2488_v33 }
  0xa2   : > { %737 = vmatprep.mubr.bf16.mxu0 %v4436_v0 }
  0xa9   : > { %2294 = vmatmul.mubr.msk.bf16.gmra.mrb[40].mxu0 %vm532_vm0, %v2489_v34 }
  0xaa   : > { %747 = vmatprep.mubr.bf16.mxu0 %v4436_v0 }
  0xb1   : > { %2295 = vmatmul.mubr.msk.bf16.gmra.mrb[44].mxu0 %vm532_vm0, %v2490_v35 }
  0xb2   : > { %757 = vmatprep.mubr.bf16.mxu0 %v4436_v0 }
  0xb9   : > { %2296 = vmatmul.mubr.msk.bf16.gmra.mrb[48].mxu0 %vm532_vm0, %v2491_v36 }
  0xba   : > { %767 = vmatprep.mubr.bf16.mxu0 %v4436_v0 }
  0xc1   : > { %2297 = vmatmul.mubr.msk.bf16.gmra.mrb[52].mxu0 %vm532_vm0, %v2492_v37 }
  0xc2   : > { %777 = vmatprep.mubr.bf16.mxu0 %v4436_v0 }
  0xc9   : > { %2298 = vmatmul.mubr.msk.bf16.gmra.mrb[56].mxu0 %vm532_vm0, %v2493_v38 }
  0xca   : > { %787 = vmatprep.mubr.bf16.mxu0 %v4436_v0 }
  0xd1   : > { %2299 = vmatmul.mubr.msk.bf16.gmra.mrb[60].mxu0 %vm532_vm0, %v2494_v39 }
  0xd2   : > { %797 = vmatprep.mubr.bf16.mxu0 %v4436_v0 }
  0xd9   : > { %2300 = vmatmul.mubr.msk.bf16.gmra.mrb[64].mxu0 %vm532_vm0, %v2495_v16  ;;  %v1133_v16 = vld [vmem:[%s4430_s2 + $0x28] sm:$0xff] }
  0xda   : > { %807 = vmatprep.mubr.bf16.mxu0 %v4436_v0 }
  0xe1   : > { %2301 = vmatmul.mubr.msk.bf16.gmra.mrb[68].mxu0 %vm532_vm0, %v2496_v31 }
  0xe2   : > { %817 = vmatprep.mubr.bf16.mxu0 %v4436_v0 }
  0xe9   : > { %2302 = vmatmul.mubr.msk.bf16.gmra.mrb[72].mxu0 %vm532_vm0, %v2497_v40 }
  0xea   : > { %827 = vmatprep.mubr.bf16.mxu0 %v4436_v0 }
 0x12c   : > { %v3029_v44 = vpop.f32.mrb[0].mxu0 }
 0x12d   : > { %v3031_v45 = vpop.f32.mrb[1].mxu0 }
 0x12e   : > { %v3033_v46 = vpop.f32.mrb[2].mxu0 }
 0x12f   : > { %v3035_v47 = vpop.f32.mrb[3].mxu0 }
 0x134   : > { %v3037_v48 = vpop.f32.mrb[4].mxu0 }
 0x135   : > { %v878_v49 = vmax.f32 %v3029_v44, %v3037_v48  ;;  %v3041_v50 = vpop.f32.mrb[5].mxu0 }
 0x136   : > { %v899_v51 = vmax.f32 %v3031_v45, %v3041_v50  ;;  %v3045_v52 = vpop.f32.mrb[6].mxu0 }
 0x137   : > { %v879_v53 = vmax.f32 %v3033_v46, %v3045_v52  ;;  %v3049_v54 = vpop.f32.mrb[7].mxu0 }
 0x138   : > { %v900_v55 = vmax.f32 %v3035_v47, %v3049_v54 }
 0x13c   : > { %v3053_v56 = vpop.f32.mrb[8].mxu0 }
 0x13d   : > { %v880_v57 = vmax.f32 %v878_v49, %v3053_v56  ;;  %v3056_v58 = vpop.f32.mrb[9].mxu0 }
 0x13e   : > { %v901_v59 = vmax.f32 %v899_v51, %v3056_v58  ;;  %v3059_v60 = vpop.f32.mrb[10].mxu0 }
 0x13f   : > { %v881_v61 = vmax.f32 %v879_v53, %v3059_v60  ;;  %v3062_v62 = vpop.f32.mrb[11].mxu0 }
 0x140   : > { %v902_v63 = vmax.f32 %v900_v55, %v3062_v62 }
 0x144   : > { %v3065_v5 = vpop.f32.mrb[12].mxu0 }
 0x145   : > { %v882_v6 = vmax.f32 %v880_v57, %v3065_v5  ;;  %v3068_v7 = vpop.f32.mrb[13].mxu0 }
 0x146   : > { %v903_v10 = vmax.f32 %v901_v59, %v3068_v7  ;;  %v3071_v11 = vpop.f32.mrb[14].mxu0 }
 0x147   : > { %v883_v15 = vmax.f32 %v881_v61, %v3071_v11  ;;  %v3074_v17 = vpop.f32.mrb[15].mxu0 }
 0x148   : > { %v904_v18 = vmax.f32 %v902_v63, %v3074_v17 }
 0x14c   : > { %v3077_v19 = vpop.f32.mrb[16].mxu0 }
 0x14d   : > { %v884_v20 = vmax.f32 %v882_v6, %v3077_v19  ;;  %v3080_v23 = vpop.f32.mrb[17].mxu0 }
 0x14e   : > { %v905_v24 = vmax.f32 %v903_v10, %v3080_v23  ;;  %v3083_v1 = vpop.f32.mrb[18].mxu0 }
 0x14f   : > { %v885_v25 = vmax.f32 %v883_v15, %v3083_v1  ;;  %v3086_v2 = vpop.f32.mrb[19].mxu0 }
 0x150   : > { %v906_v3 = vmax.f32 %v904_v18, %v3086_v2 }
 0x154   : > { %v3089_v4 = vpop.f32.mrb[20].mxu0 }
 0x155   : > { %v886_v26 = vmax.f32 %v884_v20, %v3089_v4  ;;  %v3092_v9 = vpop.f32.mrb[21].mxu0 }
 0x156   : > { %v907_v12 = vmax.f32 %v905_v24, %v3092_v9  ;;  %v3095_v13 = vpop.f32.mrb[22].mxu0 }
 0x157   : > { %v887_v14 = vmax.f32 %v885_v25, %v3095_v13  ;;  %v3098_v29 = vpop.f32.mrb[23].mxu0 }
 0x158   : > { %v908_v8 = vmax.f32 %v906_v3, %v3098_v29 }
 0x15c   : > { %v3106_v21 = vpop.f32.mrb[24].mxu0 }
 0x15d   : > { %v888_v22 = vmax.f32 %v886_v26, %v3106_v21  ;;  %v3109_v27 = vpop.f32.mrb[25].mxu0  ;;  %v3149_v26 = vld [vmem:[%s4430_s2 + $0x10] sm:$0xff] }
 0x15e   : > { %v909_v28 = vmax.f32 %v907_v12, %v3109_v27  ;;  %v3112_v30 = vpop.f32.mrb[26].mxu0  ;;  %4508 = vst [vmem:[#allocation5_spill] sm:$0xff] %v3149_v26  ;;  %v3154_v12 = vld [vmem:[%s4430_s2 + $0x18] sm:$0xff] }
 0x15f   : > { %v889_v32 = vmax.f32 %v887_v14, %v3112_v30  ;;  %v3118_v33 = vpop.f32.mrb[27].mxu0  ;;  %4509 = vst [vmem:[#allocation6_spill] sm:$0xff] %v3154_v12 }
 0x160   : > { %v910_v34 = vmax.f32 %v908_v8, %v3118_v33  ;;  %v3159_v8 = vld [vmem:[%s4430_s2 + $0x20] sm:$0xff] }
 0x161   : > { %4510 = vst [vmem:[#allocation7_spill] sm:$0xff] %v3159_v8 }
 0x164   : > { %v709_v35 = vpop.f32.mrb[28].mxu0 }
 0x165   : > { %v890_v36 = vmax.f32 %v888_v22, %v709_v35  ;;  %v3123_v37 = vpop.f32.mrb[29].mxu0 }
 0x166   : > { %v911_v38 = vmax.f32 %v909_v28, %v3123_v37  ;;  %v713_v39 = vpop.f32.mrb[30].mxu0 }
 0x167   : > { %v891_v41 = vmax.f32 %v889_v32, %v713_v39  ;;  %v3129_v42 = vpop.f32.mrb[31].mxu0 }
 0x168   : > { %v912_v43 = vmax.f32 %v910_v34, %v3129_v42  ;;  %v1215_v34 = vsel %vm1208_vm1, %v3149_v26, -inf }
 0x169   : > { %v892_v49 = vmax.f32 %v890_v36, %v891_v41  ;;  %v1218_v36 = vsel %vm1208_vm1, %v3154_v12, -inf }
 0x16a   : > { %v913_v51 = vmax.f32 %v911_v38, %v912_v43  ;;  %v1221_v43 = vsel %vm1208_vm1, %v3159_v8, -inf }
 0x16b   : > { %v893_v53 = vrot.slane %v892_v49, 4 }
 0x16c   : > { %v914_v55 = vrot.slane %v913_v51, 4  ;;  %v3134_v57 = vpop.f32.mrb[32].mxu0 }
 0x16d   : > { %v894_v59 = vmax.f32 %v892_v49, %v893_v53  ;;  %v3136_v61 = vpop.f32.mrb[33].mxu0  ;;  %v3183_v49 = vsel %vm1208_vm1, %v1133_v16, -inf }
 0x16e   : > { %v915_v63 = vmax.f32 %v913_v51, %v914_v55  ;;  %v3138_v6 = vpop.f32.mrb[34].mxu0  ;;  %v1160_v10 = vmax.f32 %v3134_v57, %v3136_v61 }
 0x16f   : > { %v895_v15 = vrot.slane %v894_v59, 2  ;;  %v3142_v18 = vpop.f32.mrb[35].mxu0 }
 0x170   : > { %v916_v20 = vrot.slane %v915_v63, 2  ;;  %1161 = vmax.xlane.f32.xlu0 %v1160_v10  ;;  %v1163_v24 = vmax.f32 %v3138_v6, %v3142_v18  ;;  %v1134_v10 = vld [vmem:[%s4430_s2 + $0x30] sm:$0xff] }
 0x171   : > { %v896_v25 = vmax.f32 %v894_v59, %v895_v15  ;;  %v1135_v15 = vld [vmem:[%s4430_s2 + $0x38] sm:$0xff] }
 0x172   : > { %v917_v3 = vmax.f32 %v915_v63, %v916_v20  ;;  %v1136_v20 = vld [vmem:[%s4430_s2 + $0x40] sm:$0xff]  ;;  %v3214_v16 = vsel %vm1208_vm1, %v1135_v15, -inf }
 0x173   : > { %v897_v14 = vrot.slane %v896_v25, 1 }
 0x174   : > { %v918_v22 = vrot.slane %v917_v3, 1  ;;  %1164 = vmax.xlane.f32.xlu0 %v1163_v24  ;;  %v3164_v28 = vpop.f32.mrb[36].mxu0 }
 0x175   : > { %v3166_v31 = vmax.f32 %v896_v25, %v897_v14  ;;  %v3168_v32 = vpop.f32.mrb[37].mxu0 }
 0x176   : > { %4511 = vst [vmem:[#allocation8_spill] sm:$0xff] %v3168_v32  ;;  %v3174_v38 = vmax.f32 %v917_v3, %v918_v22  ;;  %v3176_v40 = vpop.f32.mrb[38].mxu0  ;;  %v1166_v41 = vmax.f32 %v3164_v28, %v3168_v32  ;;  %v3219_v22 = vsel %vm1208_vm1, %v1136_v20, -inf }
 0x177   : > { %4512 = vst [vmem:[#allocation9_spill] sm:$0xff] %v3176_v40  ;;  %v944_v51 = vsub.f32 %v3106_v21, %v3166_v31  ;;  %v946_v53 = vsub.f32 %v3112_v30, %v3166_v31  ;;  %v948_v55 = vsub.f32 %v709_v35, %v3166_v31  ;;  %v950_v59 = vsub.f32 %v713_v39, %v3166_v31  ;;  %v3191_v63 = vpop.f32.mrb[39].mxu0 }
 0x178   : > { %4513 = vst [vmem:[#allocation10_spill] sm:$0xff] %v3191_v63  ;;  %v945_v21 = vsub.f32 %v3109_v27, %v3174_v38  ;;  %v947_v30 = vsub.f32 %v3118_v33, %v3174_v38  ;;  %v949_v35 = vsub.f32 %v3123_v37, %v3174_v38  ;;  %v951_v39 = vsub.f32 %v3129_v42, %v3174_v38 }
 0x179   : > { %1167 = vmax.xlane.f32.xlu0 %v1166_v41  ;;  %v1000_v24 = vmul.f32 1.442695, %v944_v51  ;;  %v1004_v25 = vmul.f32 1.442695, %v946_v53  ;;  %v1008_v3 = vmul.f32 1.442695, %v948_v55  ;;  %v1169_v27 = vmax.f32 %v3176_v40, %v3191_v63 }
 0x17a   : > { %v1012_v14 = vmul.f32 1.442695, %v950_v59  ;;  %v1227_v33 = vsel %vm1208_vm1, %v1134_v10, -inf  ;;  %v921_v37 = vsub.f32 %v3031_v45, %v3174_v38  ;;  %v1002_v42 = vmul.f32 1.442695, %v945_v21  ;;  %v1137_v41 = vld [vmem:[%s4430_s2 + $0x48] sm:$0xff] }
 0x17b   : > { %2511 = vpow2.f32 %v1000_v24  ;;  %1170 = vmax.xlane.f32.xlu1 %v1169_v27  ;;  %v923_v51 = vsub.f32 %v3035_v47, %v3174_v38  ;;  %v1006_v53 = vmul.f32 1.442695, %v947_v30  ;;  %v925_v45 = vsub.f32 %v3041_v50, %v3174_v38  ;;  %v1138_v50 = vld [vmem:[%s4430_s2 + $0x50] sm:$0xff]  ;;  %v1139_v27 = vld [vmem:[%s4430_s2 + $0x58] sm:$0xff] }
 0x17c   : > { %2513 = vpow2.f32 %v1004_v25  ;;  %v3226_v55 = vpop.f32.mrb[40].mxu0  ;;  %v927_v59 = vsub.f32 %v3049_v54, %v3174_v38  ;;  %v1010_v10 = vmul.f32 1.442695, %v949_v35  ;;  %v920_v21 = vsub.f32 %v3029_v44, %v3166_v31 }
 0x17d   : > { %1216 = vmax.xlane.f32.xlu0 %v1215_v34  ;;  %4514 = vst [vmem:[#allocation11_spill] sm:$0xff] %v3226_v55  ;;  %2515 = vpow2.f32 %v1008_v3  ;;  %v3232_v15 = vpop.f32.mrb[41].mxu0  ;;  %v922_v47 = vsub.f32 %v3033_v46, %v3166_v31  ;;  %v1014_v34 = vmul.f32 1.442695, %v951_v39  ;;  %v3239_v30 = vsel %vm1208_vm1, %v1137_v41, -inf }
 0x17e   : > { %4515 = vst [vmem:[#allocation12_spill] sm:$0xff] %v3232_v15  ;;  %2517 = vpow2.f32 %v1012_v14  ;;  %v3241_v20 = vpop.f32.mrb[42].mxu0  ;;  %v954_v35 = vmul.f32 1.442695, %v921_v37  ;;  %v924_v46 = vsub.f32 %v3037_v48, %v3166_v31  ;;  %v926_v39 = vsub.f32 %v3045_v52, %v3166_v31 }
 0x17f   : > { %2519 = vpow2.f32 %v1002_v42  ;;  %1219 = vmax.xlane.f32.xlu1 %v1218_v36  ;;  %v3248_v44 = vpop.f32.mrb[43].mxu0  ;;  %v958_v25 = vmul.f32 1.442695, %v923_v51  ;;  %v929_v3 = vsub.f32 %v3056_v58, %v3174_v38  ;;  %v1239_v36 = vsel %vm1208_vm1, %v1138_v50, -inf }
 0x180   : > { %2521 = vpow2.f32 %v1006_v53  ;;  %v962_v48 = vmul.f32 1.442695, %v925_v45  ;;  %v931_v52 = vsub.f32 %v3062_v62, %v3174_v38  ;;  %v933_v14 = vsub.f32 %v3068_v7, %v3174_v38 }
 0x181   : > { %1222 = vmax.xlane.f32.xlu0 %v1221_v43  ;;  %2523 = vpow2.f32 %v1010_v10  ;;  %v966_v43 = vmul.f32 1.442695, %v927_v59  ;;  %v935_v37 = vsub.f32 %v3074_v17, %v3174_v38  ;;  %v952_v58 = vmul.f32 1.442695, %v920_v21  ;;  %v1140_v59 = vld [vmem:[%s4430_s2 + $0x60] sm:$0xff] }
 0x182   : > { %2525 = vpow2.f32 %v1014_v34  ;;  %v928_v42 = vsub.f32 %v3053_v56, %v3166_v31  ;;  %v930_v41 = vsub.f32 %v3059_v60, %v3166_v31  ;;  %v3274_v62 = vsel %vm1208_vm1, %v1139_v27, -inf }
 0x183   : > { %1225 = vmax.xlane.f32.xlu1 %v3183_v49  ;;  %2527 = vpow2.f32 %v954_v35  ;;  %v956_v7 = vmul.f32 1.442695, %v922_v47  ;;  %v932_v17 = vsub.f32 %v3065_v5, %v3166_v31  ;;  %v960_v56 = vmul.f32 1.442695, %v924_v46  ;;  %v2498_v5 = vld [vmem:[%s4429_s1 + $0x98] sm:$0xff]  }
 0x184   : > { %v3276_v51 = vpop.f32.mrb[44].mxu0  ;;  %2529 = vpow2.f32 %v958_v25  ;;  %v964_v45 = vmul.f32 1.442695, %v926_v39  ;;  %v934_v60 = vsub.f32 %v3071_v11, %v3166_v31  ;;  %v970_v21 = vmul.f32 1.442695, %v929_v3  ;;  %2303 = vmatmul.mubr.msk.bf16.gmra.mrb[76].mxu0 %vm532_vm0, %v2498_v5 }
 0x185   : > { %1228 = vmax.xlane.f32.xlu0 %v1227_v33  ;;  %v3280_v49 = vpop.eup %2511  ;;  %v3282_v53 = vpop.f32.mrb[45].mxu0  ;;  %2531 = vpow2.f32 %v962_v48  ;;  %v937_v47 = vsub.f32 %v3080_v23, %v3174_v38  ;;  %v974_v35 = vmul.f32 1.442695, %v931_v52  ;;  %v939_v46 = vsub.f32 %v3086_v2, %v3174_v38  ;;  %837 = vmatprep.mubr.bf16.mxu0 %v4436_v0 }
 0x186   : > { %v3286_v33 = vpop.eup %2513  ;;  %v3291_v10 = vpop.f32.mrb[46].mxu0  ;;  %2533 = vpow2.f32 %v966_v43  ;;  %v1245_v52 = vsel %vm1208_vm1, %v1140_v59, -inf  ;;  %v978_v43 = vmul.f32 1.442695, %v933_v14  ;;  %v968_v25 = vmul.f32 1.442695, %v928_v42 }
 0x187   : > { %v3297_v34 = vpop.eup %2515  ;;  %v1070_v11 = vadd.f32 %v3286_v33, %v3280_v49  ;;  %1231 = vmax.xlane.f32.xlu1 %v3214_v16  ;;  %v3302_v50 = vpop.f32.mrb[47].mxu0  ;;  %2535 = vpow2.f32 %v952_v58  ;;  %v4522_v2 = vsub.f32 %v3092_v9, %v3174_v38  ;;  %v4526_v12 = vmax.f32 %v3241_v20, %v3248_v44 }
 0x188   : > { %4516 = vst [vmem:[#allocation13_spill] sm:$0xff] %v3302_v50  ;;  %v3306_v39 = vpop.eup %2517  ;;  %2537 = vpow2.f32 %v956_v7 }
 0x189   : > { %1234 = vmax.xlane.f32.xlu0 %v3219_v22  ;;  %v3315_v27 = vpop.eup %2519  ;;  %v1071_v48 = vadd.f32 %v3297_v34, %v1070_v11  ;;  %2539 = vpow2.f32 %v960_v56  ;;  %v982_v22 = vmul.f32 1.442695, %v935_v37 }
 0x18a   : > { %v3319_v58 = vpop.eup %2521  ;;  %2541 = vpow2.f32 %v964_v45  ;;  %v972_v45 = vmul.f32 1.442695, %v930_v41  ;;  %v976_v41 = vmul.f32 1.442695, %v932_v17 }
 0x18b   : > { %v3326_v24 = vpop.eup %2523  ;;  %v1072_v11 = vadd.f32 %v3306_v39, %v1071_v48  ;;  %v1079_v56 = vadd.f32 %v3319_v58, %v3315_v27  ;;  %1237 = vmax.xlane.f32.xlu1 %v3239_v30  ;;  %2543 = vpow2.f32 %v970_v21 }
 0x18c   : > { %v3334_v37 = vpop.eup %2525  ;;  %v3336_v42 = vpop.f32.mrb[48].mxu0  ;;  %2545 = vpow2.f32 %v974_v35 }
 0x18d   : > { %1240 = vmax.xlane.f32.xlu0 %v1239_v36  ;;  %4517 = vst [vmem:[#allocation14_spill] sm:$0xff] %v3336_v42  ;;  %v3343_v30 = vpop.eup %2527  ;;  %v1073_v21 = vrot.slane %v1072_v11, 4  ;;  %v1080_v14 = vadd.f32 %v3326_v24, %v1079_v56  ;;  %v3349_v36 = vld [vmem:[%s4430_s2 + $0x68] sm:$0xff]  ;;  %v3351_v35 = vpop.f32.mrb[49].mxu0  ;;  %2547 = vpow2.f32 %v978_v43  ;;  %v980_v56 = vmul.f32 1.442695, %v934_v60 }
 0x18e   : > { %4518 = vst [vmem:[#allocation15_spill] sm:$0xff] %v3349_v36  ;;  %4519 = vst [vmem:[#allocation16_spill] sm:$0xff] %v3351_v35  ;;  %v3354_v59 = vpop.eup %2529  ;;  %v3356_v48 = vpop.f32.mrb[50].mxu0  ;;  %2549 = vpow2.f32 %v982_v22  ;;  %v1248_v22 = vsel %vm1208_vm1, %v3349_v36, -inf }
 0x18f   : > { %v3360_v7 = vpop.eup %2531  ;;  %v1074_v16 = vadd.f32 %v1073_v21, %v1072_v11  ;;  %v1081_v3 = vadd.f32 %v3334_v37, %v1080_v14  ;;  %1243 = vmax.xlane.f32.xlu1 %v3274_v62  ;;  %v3364_v43 = vpop.f32.mrb[51].mxu0  ;;  %v1025_v17 = vadd.f32 %v3354_v59, %v3343_v30  ;;  %2551 = vpow2.f32 %v968_v25 }
 0x190   : > { %v3368_v0 = vpop.eup %2533  ;;  %2553 = vpow2.f32 %v972_v45  ;;  %v986_v62 = vmul.f32 1.442695, %v937_v47 }
 0x191   : > { %1246 = vmax.xlane.f32.xlu0 %v1245_v52  ;;  %v3377_v11 = vpop.eup %2535  ;;  %v1075_v14 = vrot.slane %v1074_v16, 2  ;;  %v1082_v21 = vrot.slane %v1081_v3, 4  ;;  %v1026_v25 = vadd.f32 %v3360_v7, %v1025_v17  ;;  %2555 = vpow2.f32 %v976_v41 }
 0x192   : > { %v3380_v5 = vpop.eup %2537  ;;  %2557 = vpow2.f32 %v980_v56  ;;  %v990_v52 = vmul.f32 1.442695, %v939_v46  ;;  %v4520_v41 = vmax.f32 %v3226_v55, %v3232_v15  ;;  %v994_v46 = vmul.f32 1.442695, %v4522_v2 }
 0x193   : > { %v3385_v60 = vpop.eup %2539  ;;  %v1076_v45 = vadd.f32 %v1075_v14, %v1074_v16  ;;  %v1083_v54 = vadd.f32 %v1082_v21, %v1081_v3  ;;  %1249 = vmax.xlane.f32.xlu1 %v1248_v22  ;;  %v1027_v23 = vadd.f32 %v3368_v0, %v1026_v25  ;;  %v1016_v47 = vadd.f32 %v3380_v5, %v3377_v11  ;;  %v2499_v25 = vld [vmem:[%s4429_s1 + $0xa0] sm:$0xff]  }
 0x194   : > { %v3390_v36 = vpop.eup %2541  ;;  %v3395_v56 = vpop.f32.mrb[52].mxu0  ;;  %2559 = vpow2.f32 %v986_v62  ;;  %v4525_v2 = vsub.f32 %v3098_v29, %v3174_v38  ;;  %2304 = vmatmul.mubr.msk.bf16.gmra.mrb[80].mxu0 %vm532_vm0, %v2499_v25 }
 0x195   : > { %1173 = vmax.xlane.f32.xlu0 %v4520_v41  ;;  %4521 = vst [vmem:[#allocation17_spill] sm:$0xff] %v3395_v56  ;;  %v3400_v3 = vpop.eup %2543  ;;  %v1077_v16 = vrot.slane %v1076_v45, 1  ;;  %v1084_v17 = vrot.slane %v1083_v54, 2  ;;  %v3402_v22 = vpop.f32.mrb[53].mxu0  ;;  %v1028_v14 = vrot.slane %v1027_v23, 4  ;;  %v1017_v21 = vadd.f32 %v3385_v60, %v1016_v47 }
 0x196   : > { %4523 = vst [vmem:[#allocation18_spill] sm:$0xff] %v3402_v22  ;;  %v3408_v41 = vpop.eup %2545  ;;  %v3410_v62 = vpop.f32.mrb[54].mxu0  ;;  %v1190_v9 = vmax.f32 %v3395_v56, %v3402_v22  ;;  %2561 = vpow2.f32 %v990_v52  ;;  %v998_v15 = vmul.f32 1.442695, %v4525_v2  ;;  %v4528_v52 = vmax.f32 %v3276_v51, %v3282_v53 }
 0x197   : > { %4524 = vst [vmem:[#allocation19_spill] sm:$0xff] %v3410_v62  ;;  %v3417_v8 = vpop.eup %2547  ;;  %v1078_v55 = vadd.f32 %v1077_v16, %v1076_v45  ;;  %v1085_v47 = vadd.f32 %v1084_v17, %v1083_v54  ;;  %1176 = vmax.xlane.f32.xlu1 %v4526_v12  ;;  %v3422_v63 = vpop.f32.mrb[55].mxu0  ;;  %v1029_v40 = vadd.f32 %v1028_v14, %v1027_v23  ;;  %2563 = vpow2.f32 %v994_v46 }
 0x198   : > { %4527 = vst [vmem:[#allocation20_spill] sm:$0xff] %v3422_v63  ;;  %v1018_v26 = vadd.f32 %v3390_v36, %v1017_v21  ;;  %v3425_v32 = vpop.eup %2549  ;;  %v1193_v29 = vmax.f32 %v3410_v62, %v3422_v63  ;;  %v1043_v38 = vadd.f32 %v3408_v41, %v3400_v3  ;;  %v4529_v12 = vsub.f32 %v3077_v19, %v3166_v31 }
 0x199   : > { %1179 = vmax.xlane.f32.xlu0 %v4528_v52  ;;  %v3438_v45 = vpop.eup %2551  ;;  %2565 = vrcp.f32 %v1078_v55  ;;  %v1086_v23 = vrot.slane %v1085_v47, 1  ;;  %v1030_v16 = vrot.slane %v1029_v40, 2  ;;  %v4530_v14 = vmov 0  }
 0x19a   : > { %v984_v54 = vmul.f32 1.442695, %v4529_v12  ;;  %v1019_v17 = vrot.slane %v1018_v26, 4  ;;  %847 = vmatprep.mubr.bf16.mxu0 %v4530_v14  ;;  %v3441_v21 = vpop.eup %2553  ;;  %v1044_v2 = vadd.f32 %v3417_v8, %v1043_v38  ;;  %2567 = vpow2.f32 %v998_v15 }
 0x19b   : > { %v4531_v46 = vsub.f32 %v3083_v1, %v3166_v31  ;;  %v3447_v52 = vpop.eup %2555  ;;  %v1087_v25 = vadd.f32 %v1086_v23, %v1085_v47  ;;  %v4532_v55 = vmax.f32 %v3291_v10, %v3302_v50  ;;  %v1031_v12 = vadd.f32 %v1030_v16, %v1029_v40 }
 0x19c   : > { %v1020_v63 = vadd.f32 %v1019_v17, %v1018_v26  ;;  %v1034_v62 = vadd.f32 %v3441_v21, %v3438_v45  ;;  %v3454_v22 = vpop.eup %2557  ;;  %v4533_v15 = vmax.f32 %v3336_v42, %v3351_v35  ;;  %v3459_v1 = vpop.f32.mrb[56].mxu0  ;;  %v1045_v38 = vadd.f32 %v3425_v32, %v1044_v2  ;;  %v2500_v26 = vld [vmem:[%s4429_s1 + $0xa8] sm:$0xff]  }
 0x19d   : > { %v988_v19 = vmul.f32 1.442695, %v4531_v46  ;;  %1182 = vmax.xlane.f32.xlu1 %v4532_v55  ;;  %2569 = vpow2.f32 %v984_v54  ;;  %v4534_v47 = vsub.f32 %v3089_v4, %v3166_v31  ;;  %v3468_v40 = vpop.f32.mrb[57].mxu0  ;;  %v1032_v16 = vrot.slane %v1031_v12, 1  ;;  %2305 = vmatmul.mubr.msk.bf16.gmra.mrb[84].mxu0 %vm532_vm0, %v2500_v26 }
 0x19e   : > { %1185 = vmax.xlane.f32.xlu0 %v4533_v15  ;;  %2571 = vrcp.f32 %v1087_v25  ;;  %4535 = vst [vmem:[#allocation21_spill] sm:$0xff] %v3468_v40  ;;  %v1021_v17 = vrot.slane %v1020_v63, 2  ;;  %v1035_v46 = vadd.f32 %v3447_v52, %v1034_v62  ;;  %v3471_v55 = vpop.eup %2559  ;;  %v3473_v15 = vpop.f32.mrb[58].mxu0  ;;  %v1196_v54 = vmax.f32 %v3459_v1, %v3468_v40  ;;  %857 = vmatprep.mubr.bf16.mxu0 %v4530_v14 }
 0x19f   : > { %v992_v23 = vmul.f32 1.442695, %v4534_v47  ;;  %v1046_v4 = vrot.slane %v1045_v38, 4  ;;  %2573 = vpow2.f32 %v988_v19  ;;  %v4536_v2 = vsub.f32 %v3095_v13, %v3166_v31  ;;  %v3483_v56 = vpop.f32.mrb[59].mxu0 }
 0x1a0   : > { %v4537_v25 = vmax.f32 %v3356_v48, %v3364_v43  ;;  %4538 = vst [vmem:[#allocation22_spill] sm:$0xff] %v3483_v56  ;;  %v1033_v62 = vadd.f32 %v1032_v16, %v1031_v12  ;;  %v1022_v35 = vadd.f32 %v1021_v17, %v1020_v63  ;;  %v1036_v42 = vadd.f32 %v3454_v22, %v1035_v46  ;;  %v3486_v50 = vpop.eup %2561  ;;  %v3504_v46 = vld [vmem:[%s4430_s2 + $0x70] sm:$0xff] }
 0x1a1   : > { %v996_v47 = vmul.f32 1.442695, %v4536_v2  ;;  %v1199_v19 = vmax.f32 %v3473_v15, %v3483_v56  ;;  %v1047_v40 = vadd.f32 %v1046_v4, %v1045_v38  ;;  %2575 = vpow2.f32 %v992_v23  ;;  %v3494_v63 = vpop.eup %2563  ;;  %4540 = vst [vmem:[#allocation24_spill] sm:$0xff] %v3504_v46 }
 0x1a2   : > { %1188 = vmax.xlane.f32.xlu1 %v4537_v25  ;;  %1191 = vmax.xlane.f32.xlu0 %v1190_v9  ;;  %2577 = vrcp.f32 %v1033_v62  ;;  %v1023_v13 = vrot.slane %v1022_v35, 1  ;;  %v1037_v31 = vrot.slane %v1036_v42, 4  ;;  %v1061_v2 = vadd.f32 %v3486_v50, %v3471_v55 }
 0x1a3   : > { %v1048_v12 = vrot.slane %v1047_v40, 2  ;;  %2579 = vpow2.f32 %v996_v47  ;;  %v2566_v9 = vpop.eup %2565 }
 0x1a4   : > { %v1024_v16 = vadd.f32 %v1023_v13, %v1022_v35  ;;  %v1038_v17 = vadd.f32 %v1037_v31, %v1036_v42  ;;  %v1062_v38 = vadd.f32 %v3494_v63, %v1061_v2  ;;  %v3497_v23 = vpop.eup %2567  ;;  %v3499_v26 = vpop.f32.mrb[60].mxu0  ;;  %v1120_v25 = vmul.f32 %v2566_v9, %v3280_v49  ;;  %v2501_v13 = vld [vmem:[%s4429_s1 + $0xb0] sm:$0xff]  }
 0x1a5   : > { %4539 = vst [vmem:[#allocation23_spill] sm:$0xff] %v3499_v26  ;;  %v1049_v4 = vadd.f32 %v1048_v12, %v1047_v40  ;;  %v1122_v47 = vmul.f32 %v2566_v9, %v3286_v33  ;;  %v1124_v35 = vmul.f32 %v2566_v9, %v3297_v34  ;;  %v3509_v42 = vpop.f32.mrb[61].mxu0  ;;  %v1126_v62 = vmul.f32 %v2566_v9, %v3306_v39 }
 0x1a6   : > { %1194 = vmax.xlane.f32.xlu1 %v1193_v29  ;;  %1197 = vmax.xlane.f32.xlu0 %v1196_v54  ;;  %4541 = vst [vmem:[#allocation25_spill] sm:$0xff] %v3509_v42  ;;  %2581 = vrcp.f32 %v1024_v16  ;;  %v1039_v29 = vrot.slane %v1038_v17, 2  ;;  %v1063_v54 = vadd.f32 %v3497_v23, %v1062_v38  ;;  %v3518_v40 = vpop.f32.mrb[62].mxu0  ;;  %v1202_v49 = vmax.f32 %v3499_v26, %v3509_v42 }
 0x1a7   : > { %v3516_v31 = vpop.eup %2569  ;;  %v1050_v33 = vrot.slane %v1049_v4, 1  ;;  %v3522_v34 = vpack.c.bf16 %v1122_v47, %v1120_v25  ;;  %v3524_v12 = vpop.f32.mrb[63].mxu0  ;;  %v1251_v39 = vsel %vm1208_vm1, %v3504_v46, -inf  ;;  %v3528_v38 = vpack.c.bf16 %v1126_v62, %v1124_v35  ;;  %2306 = vmatmul.mubr.msk.bf16.gmra.mrb[88].mxu0 %vm532_vm0, %v2501_v13 }
 0x1a8   : > { %v2572_v2 = vpop.eup %2571  ;;  %v1040_v9 = vadd.f32 %v1039_v29, %v1038_v17  ;;  %v1064_v16 = vrot.slane %v1063_v54, 4  ;;  %v1205_v42 = vmax.f32 %v3518_v40, %v3524_v12  ;;  %867 = vmatprep.mubr.bf16.mxu0 %v4530_v14 }
 0x1a9   : > { %4542 = vst [vmem:[#allocation26_spill] sm:$0xff] %v3522_v34  ;;  %4543 = vst [vmem:[#allocation27_spill] sm:$0xff] %v3528_v38  ;;  %v3530_v56 = vpop.eup %2573  ;;  %v1051_v26 = vadd.f32 %v1050_v33, %v1049_v4  ;;  %v1121_v25 = vmul.f32 %v2572_v2, %v3315_v27  ;;  %v1123_v47 = vmul.f32 %v2572_v2, %v3319_v58 }
 0x1aa   : > { %1200 = vmax.xlane.f32.xlu1 %v1199_v19  ;;  %1203 = vmax.xlane.f32.xlu0 %v1202_v49  ;;  %v3537_v19 = vld [vmem:[%s4430_s2 + $0x78] sm:$0xff]  ;;  %v1041_v17 = vrot.slane %v1040_v9, 1  ;;  %v1065_v29 = vadd.f32 %v1064_v16, %v1063_v54  ;;  %v1052_v35 = vadd.f32 %v3530_v56, %v3516_v31  ;;  %v1125_v62 = vmul.f32 %v2572_v2, %v3326_v24 }
 0x1ab   : > { %v3545_v49 = vpop.eup %2575  ;;  %2583 = vrcp.f32 %v1051_v26  ;;  %v3547_v4 = vpack.c.bf16 %v1123_v47, %v1121_v25  ;;  %v1127_v33 = vmul.f32 %v2572_v2, %v3334_v37  ;;  %v1254_v58 = vsel %vm1208_vm1, %v3537_v19, -inf }
 0x1ac   : > { %v2578_v27 = vpop.eup %2577  ;;  %v1042_v54 = vadd.f32 %v1041_v17, %v1040_v9  ;;  %v1066_v16 = vrot.slane %v1065_v29, 2  ;;  %v1053_v24 = vadd.f32 %v3545_v49, %v1052_v35  ;;  %v2502_v9 = vld [vmem:[%s4429_s1 + $0xb8] sm:$0xff]  }
 0x1ad   : > { %4544 = vst [vmem:[#allocation28_spill] sm:$0xff] %v3547_v4  ;;  %v3554_v46 = vpop.eup %2579  ;;  %v1097_v13 = vmul.f32 %v2578_v27, %v3343_v30  ;;  %v1099_v26 = vmul.f32 %v2578_v27, %v3354_v59  ;;  %v1101_v25 = vmul.f32 %v2578_v27, %v3360_v7  ;;  %v1103_v37 = vmul.f32 %v2578_v27, %v3368_v0 }
 0x1ae   : > { %1206 = vmax.xlane.f32.xlu1 %v1205_v42  ;;  %1252 = vmax.xlane.f32.xlu0 %v1251_v39  ;;  %2585 = vrcp.f32 %v1042_v54  ;;  %v1067_v42 = vadd.f32 %v1066_v16, %v1065_v29  ;;  %v1054_v2 = vadd.f32 %v3554_v46, %v1053_v24  ;;  %v3561_v47 = vpack.c.bf16 %v1127_v33, %v1125_v62 }
 0x1af   : > { %v3566_v17 = vpack.c.bf16 %v1099_v26, %v1097_v13  ;;  %v3568_v30 = vpack.c.bf16 %v1103_v37, %v1101_v25  ;;  %2307 = vmatmul.mubr.msk.bf16.gmra.mrb[92].mxu0 %vm532_vm0, %v2502_v9 }
 0x1b0   : > { %4545 = vst [vmem:[#allocation29_spill] sm:$0xff] %v3561_v47  ;;  %v2582_v59 = vpop.eup %2581  ;;  %v1068_v7 = vrot.slane %v1067_v42, 1  ;;  %v1055_v35 = vrot.slane %v1054_v2, 4  ;;  %2120 = vmatprep.mubr.bf16.mxu0 %v4530_v14 }
 0x1b1   : > { %4546 = vst [vmem:[#allocation30_spill] sm:$0xff] %v3566_v17  ;;  %4547 = vst [vmem:[#allocation31_spill] sm:$0xff] %v3568_v30  ;;  %2088 = vmatprep.subr.bf16.mxu0 %v3566_v17  ;;  %v1096_v0 = vmul.f32 %v2582_v59, %v3377_v11  ;;  %v1098_v39 = vmul.f32 %v2582_v59, %v3380_v5  ;;  %v1100_v29 = vmul.f32 %v2582_v59, %v3385_v60 }
 0x1b2   : > { %1255 = vmax.xlane.f32.xlu1 %v1254_v58  ;;  %v1102_v62 = vmul.f32 %v2582_v59, %v3390_v36  ;;  %v1069_v33 = vadd.f32 %v1068_v7, %v1067_v42  ;;  %v1056_v27 = vadd.f32 %v1055_v35, %v1054_v2 }
 0x1b3   : > { %v3576_v54 = vpack.c.bf16 %v1098_v39, %v1096_v0 }
 0x1b4   : > { %v3578_v16 = vpack.c.bf16 %v1102_v62, %v1100_v29  ;;  %2587 = vrcp.f32 %v1069_v33  ;;  %v1057_v58 = vrot.slane %v1056_v27, 2  ;;  %v1147_v33 = vld [vmem:[%s4431_s3 + $0x18] sm:$0xff] }
 0x1b5   : > { %4548 = vst [vmem:[#allocation32_spill] sm:$0xff] %v3576_v54  ;;  %v2584_v24 = vpop.eup %2583  ;;  %2089 = vmatpush1.bf16.msra.mxu0 %v3576_v54 }
 0x1b6   : > { %4549 = vst [vmem:[#allocation33_spill] sm:$0xff] %v3578_v16  ;;  %2090 = vmatprep.subr.bf16.mxu0 %v3568_v30  ;;  %v1105_v5 = vmul.f32 %v2584_v24, %v3400_v3  ;;  %v1107_v36 = vmul.f32 %v2584_v24, %v3408_v41  ;;  %v1109_v60 = vmul.f32 %v2584_v24, %v3417_v8 }
 0x1b7   : > { %v1111_v11 = vmul.f32 %v2584_v24, %v3425_v32  ;;  %v1058_v13 = vadd.f32 %v1057_v58, %v1056_v27  ;;  %v1148_v24 = vld [vmem:[%s4431_s3 + $0x20] sm:$0xff] }
 0x1b8   : > { %v2586_v26 = vpop.eup %2585  ;;  %v3587_v25 = vpack.c.bf16 %v1107_v36, %v1105_v5  ;;  %v1149_v5 = vld [vmem:[%s4431_s3 + $0x28] sm:$0xff] }
 0x1b9   : > { %v3589_v37 = vpack.c.bf16 %v1111_v11, %v1109_v60  ;;  %2091 = vmatpush1.bf16.msra.mxu0 %v3578_v16  ;;  %v1104_v42 = vmul.f32 %v2586_v26, %v3438_v45  ;;  %v1106_v2 = vmul.f32 %v2586_v26, %v3441_v21  ;;  %v1108_v3 = vmul.f32 %v2586_v26, %v3447_v52  ;;  %v1150_v11 = vld [vmem:[%s4431_s3 + $0x30] sm:$0xff] }
 0x1ba   : > { %4550 = vst [vmem:[#allocation34_spill] sm:$0xff] %v3587_v25  ;;  %v1110_v41 = vmul.f32 %v2586_v26, %v3454_v22  ;;  %2092 = vmatprep.subr.bf16.mxu0 %v3587_v25  ;;  %v1059_v8 = vrot.slane %v1058_v13, 1  ;;  %v1635_v60 = vpack.c.bf16 %v1149_v5, %v1148_v24  ;;  %v1211_v26 = vpop.xlane.xlu1 %1210  ;;  %v4558_v24 = vld [vmem:[#allocation8_spill] sm:$0xff] }
 0x1bb   : > { %4551 = vst [vmem:[#allocation35_spill] sm:$0xff] %v3589_v37  ;;  %v3597_v32 = vpack.c.bf16 %v1106_v2, %v1104_v42 }
 0x1bc   : > { %v3599_v9 = vpack.c.bf16 %v1110_v41, %v1108_v3  ;;  %v1060_v59 = vadd.f32 %v1059_v8, %v1058_v13  ;;  %v1151_v13 = vld [vmem:[%s4431_s3 + $0x38] sm:$0xff]  ;;  %v1672_v42 = vsel %vm1208_vm1, %v1635_v60, 0 }
 0x1bd   : > { %4552 = vst [vmem:[#allocation36_spill] sm:$0xff] %v3597_v32  ;;  %2093 = vmatpush1.bf16.msra.mxu0 %v3597_v32  ;;  %v1636_v2 = vpack.c.bf16 %v1151_v13, %v1150_v11 }
 0x1be   : > { %4553 = vst [vmem:[#allocation37_spill] sm:$0xff] %v3599_v9  ;;  %v2588_v7 = vpop.eup %2587  ;;  %2094 = vmatprep.subr.bf16.mxu0 %v3589_v37  ;;  %2589 = vrcp.f32 %v1060_v59  ;;  %v1214_v8 = vpop.xlane.xlu1 %1213 }
 0x1bf   : > { %v1113_v45 = vmul.f32 %v2588_v7, %v3471_v55  ;;  %v1115_v21 = vmul.f32 %v2588_v7, %v3486_v50  ;;  %v1117_v22 = vmul.f32 %v2588_v7, %v3494_v63  ;;  %v1119_v52 = vmul.f32 %v2588_v7, %v3497_v23 }
 0x1c1   : > { %2095 = vmatpush1.bf16.msra.mxu0 %v3599_v9  ;;  %v3608_v35 = vpack.c.bf16 %v1115_v21, %v1113_v45  ;;  %v3610_v0 = vpack.c.bf16 %v1119_v52, %v1117_v22  ;;  %v2719_v45 = vld [vmem:[%s4430_s2] sm:$0xff]  ;;  %v1675_v52 = vsel %vm1208_vm1, %v1636_v2, 0 }
 0x1c3   : > { %4554 = vst [vmem:[#allocation38_spill] sm:$0xff] %v3608_v35  ;;  %4555 = vst [vmem:[#allocation39_spill] sm:$0xff] %v3610_v0  ;;  %2096 = vmatprep.subr.bf16.mxu0 %v3608_v35 }
 0x1c8   : > { %v2590_v39 = vpop.eup %2589 }
 0x1c9   : > { %v1112_v29 = vmul.f32 %v2590_v39, %v3516_v31  ;;  %v1114_v62 = vmul.f32 %v2590_v39, %v3530_v56  ;;  %v1116_v55 = vmul.f32 %v2590_v39, %v3545_v49  ;;  %v1118_v50 = vmul.f32 %v2590_v39, %v3554_v46  ;;  %v1144_v56 = vld [vmem:[%s4431_s3] sm:$0xff]  ;;  %v1145_v46 = vld [vmem:[%s4431_s3 + $0x8] sm:$0xff]  ;;  %v1146_v31 = vld [vmem:[%s4431_s3 + $0x10] sm:$0xff] }
 0x1ca   : > { %v1633_v49 = vpack.c.bf16 %v1145_v46, %v1144_v56  ;;  %v1634_v27 = vpack.c.bf16 %v1147_v33, %v1146_v31 }
 0x1cb   : > { %v3617_v63 = vpack.c.bf16 %v1114_v62, %v1112_v29  ;;  %v3619_v23 = vpack.c.bf16 %v1118_v50, %v1116_v55 }
 0x1cc   : > { %2427 = vmatprep.subr.msk.bf16.mxu1 %vm1208_vm1, %v1633_v49  ;;  %v1666_v58 = vsel %vm1208_vm1, %v1633_v49, 0  ;;  %v1669_v36 = vsel %vm1208_vm1, %v1634_v27, 0 }
 0x1cd   : > { %4556 = vst [vmem:[#allocation40_spill] sm:$0xff] %v3617_v63  ;;  %4557 = vst [vmem:[#allocation41_spill] sm:$0xff] %v3619_v23  ;;  %2097 = vmatpush1.bf16.msra.mxu0 %v3617_v63  ;;  %2356 = vmatpush3.bf16.xpose.msra.mxu1 %v1666_v58 }
 0x1ce   : > { %2098 = vmatprep.subr.bf16.mxu0 %v3610_v0  ;;  %2428 = vmatprep.subr.msk.bf16.mxu1 %vm1208_vm1, %v1634_v27 }
 0x1d1   : > { %2099 = vmatpush1.bf16.msra.mxu0 %v3619_v23 }
 0x1d2   : > { %2100 = vmatprep.subr.bf16.mxu0 %v3547_v4  ;;  %v2722_v4 = vld [vmem:[%s4430_s2 + $0x30] sm:$0xff] }
 0x1d5   : > { %2101 = vmatpush1.bf16.msra.mxu0 %v3522_v34  ;;  %2358 = vmatpush3.bf16.xpose.msra.mxu1 %v1669_v36  ;;  %v4559_v36 = vld [vmem:[#allocation5_spill] sm:$0xff] }
 0x1d6   : > { %2102 = vmatprep.subr.bf16.mxu0 %v3561_v47  ;;  %2429 = vmatprep.subr.msk.bf16.mxu1 %vm1208_vm1, %v1635_v60  ;;  %v1152_v34 = vld [vmem:[%s4431_s3 + $0x40] sm:$0xff] }
 0x1d9   : > { %2103 = vmatpush1.bf16.msra.mxu0 %v3528_v38 }
 0x1dd   : > { %2360 = vmatpush3.bf16.xpose.msra.mxu1 %v1672_v42 }
 0x1de   : > { %2430 = vmatprep.subr.msk.bf16.mxu1 %vm1208_vm1, %v1636_v2 }
 0x1e5   : > { %2362 = vmatpush3.bf16.xpose.msra.mxu1 %v1675_v52 }
 0x1fd   : > { %v1162_v3 = vpop.xlane.xlu0 %1161 }
 0x1fe   : > { %v1257_v41 = vmax.f32 %v1162_v3, %v1211_v26 }
 0x200   : > { %v1273_v59 = vsub.f32 %v3134_v57, %v1257_v41  ;;  %v1274_v7 = vsub.f32 %v3136_v61, %v1257_v41  ;;  %v1369_v21 = vsub.f32 %v2719_v45, %v1257_v41  ;;  %v2720_v57 = vld [vmem:[%s4430_s2 + $0x8] sm:$0xff]  ;;  %v4560_v41 = vld [vmem:[#allocation9_spill] sm:$0xff] }
 0x201   : > { %v1165_v22 = vpop.xlane.xlu0 %1164  ;;  %v4562_v45 = vld [vmem:[#allocation6_spill] sm:$0xff] }
 0x202   : > { %v1385_v39 = vmul.f32 1.442695, %v1369_v21  ;;  %v1258_v29 = vmax.f32 %v1165_v22, %v1214_v8  ;;  %v1305_v62 = vmul.f32 1.442695, %v1273_v59  ;;  %v1307_v55 = vmul.f32 1.442695, %v1274_v7 }
 0x203   : > { %v4561_v59 = vld [vmem:[#allocation10_spill] sm:$0xff] }
 0x204   : > { %v1275_v50 = vsub.f32 %v3138_v6, %v1258_v29  ;;  %v1276_v56 = vsub.f32 %v3142_v18, %v1258_v29  ;;  %v1370_v61 = vsub.f32 %v2720_v57, %v1258_v29  ;;  %2591 = vpow2.f32 %v1385_v39 }
 0x205   : > { %2593 = vpow2.f32 %v1305_v62 }
 0x206   : > { %v1168_v46 = vpop.xlane.xlu0 %1167  ;;  %v1309_v31 = vmul.f32 1.442695, %v1275_v50  ;;  %v1387_v49 = vmul.f32 1.442695, %v1370_v61  ;;  %v1311_v33 = vmul.f32 1.442695, %v1276_v56  ;;  %2595 = vpow2.f32 %v1307_v55 }
 0x208   : > { %v1171_v27 = vpop.xlane.xlu1 %1170  ;;  %2597 = vpow2.f32 %v1309_v31 }
 0x209   : > { %2599 = vpow2.f32 %v1387_v49 }
 0x20a   : > { %v1217_v58 = vpop.xlane.xlu0 %1216  ;;  %2601 = vpow2.f32 %v1311_v33 }
 0x20b   : > { %v1259_v6 = vmax.f32 %v1168_v46, %v1217_v58 }
 0x20c   : > { %v1220_v11 = vpop.xlane.xlu1 %1219 }
 0x20d   : > { %v1277_v18 = vsub.f32 %v3164_v28, %v1259_v6  ;;  %v1278_v5 = vsub.f32 %v4558_v24, %v1259_v6  ;;  %v1371_v60 = vsub.f32 %v4559_v36, %v1259_v6  ;;  %v1260_v13 = vmax.f32 %v1171_v27, %v1220_v11 }
 0x20e   : > { %v1223_v26 = vpop.xlane.xlu0 %1222  ;;  %v3676_v22 = vpop.eup %2591 }
 0x20f   : > { %v1313_v42 = vmul.f32 1.442695, %v1277_v18  ;;  %v1315_v2 = vmul.f32 1.442695, %v1278_v5  ;;  %v1389_v3 = vmul.f32 1.442695, %v1371_v60  ;;  %v1279_v8 = vsub.f32 %v4560_v41, %v1260_v13  ;;  %v3678_v52 = vpop.eup %2593 }
 0x210   : > { %v1280_v7 = vsub.f32 %v4561_v59, %v1260_v13  ;;  %v1372_v21 = vsub.f32 %v4562_v45, %v1260_v13  ;;  %v1226_v28 = vpop.xlane.xlu1 %1225  ;;  %v3680_v55 = vpop.eup %2595  ;;  %v1465_v50 = vsel %vm1208_vm1, %v3676_v22, 0.0 }
 0x211   : > { %2603 = vpow2.f32 %v1313_v42  ;;  %v1317_v39 = vmul.f32 1.442695, %v1279_v8  ;;  %1466 = vadd.xlane.f32.xlu0 %v1465_v50  ;;  %v1417_v49 = vadd.f32 %v3680_v55, %v3678_v52 }
 0x212   : > { %2605 = vpow2.f32 %v1315_v2  ;;  %v1319_v29 = vmul.f32 1.442695, %v1280_v7  ;;  %v1229_v62 = vpop.xlane.xlu0 %1228  ;;  %v3684_v56 = vpop.eup %2597  ;;  %v1391_v57 = vmul.f32 1.442695, %v1372_v21  ;;  %v4563_v21 = vld [vmem:[#allocation11_spill] sm:$0xff] }
 0x213   : > { %2607 = vpow2.f32 %v1389_v3  ;;  %v3686_v61 = vpop.eup %2599 }
 0x214   : > { %2609 = vpow2.f32 %v1317_v39  ;;  %v1232_v46 = vpop.xlane.xlu1 %1231  ;;  %v3688_v31 = vpop.eup %2601  ;;  %v1468_v33 = vsel %vm1208_vm1, %v3686_v61, 0.0 }
 0x215   : > { %2611 = vpow2.f32 %v1319_v29  ;;  %1469 = vadd.xlane.f32.xlu1 %v1468_v33  ;;  %1418 = vadd.xlane.f32.xlu0 %v1417_v49  ;;  %v1420_v6 = vadd.f32 %v3688_v31, %v3684_v56 }
 0x216   : > { %v3694_v27 = vpop.xlane.xlu0 %1234  ;;  %2613 = vpow2.f32 %v1391_v57  ;;  %v4564_v57 = vld [vmem:[#allocation7_spill] sm:$0xff] }
 0x218   : > { %v3696_v58 = vpop.xlane.xlu1 %1237 }
 0x219   : > { %1421 = vadd.xlane.f32.xlu1 %v1420_v6 }
 0x21a   : > { %v3700_v18 = vpop.xlane.xlu0 %1240 }
 0x21b   : > { %v3702_v24 = vpop.eup %2603 }
 0x21c   : > { %v3704_v5 = vpop.eup %2605  ;;  %v3708_v60 = vpop.xlane.xlu1 %1243 }
 0x21d   : > { %v3706_v36 = vpop.eup %2607  ;;  %v1423_v11 = vadd.f32 %v3704_v5, %v3702_v24 }
 0x21e   : > { %v3712_v13 = vpop.eup %2609  ;;  %v3714_v42 = vpop.xlane.xlu0 %1246  ;;  %v1471_v7 = vsel %vm1208_vm1, %v3706_v36, 0.0 }
 0x21f   : > { %v3716_v2 = vpop.eup %2611  ;;  %1424 = vadd.xlane.f32.xlu0 %v1423_v11  ;;  %v4565_v11 = vld [vmem:[#allocation12_spill] sm:$0xff] }
 0x220   : > { %v1426_v3 = vadd.f32 %v3716_v2, %v3712_v13  ;;  %v3720_v41 = vpop.xlane.xlu1 %1249  ;;  %v3722_v8 = vpop.eup %2613 }
 0x221   : > { %v1474_v50 = vsel %vm1208_vm1, %v3722_v8, 0.0 }
 0x222   : > { %1427 = vadd.xlane.f32.xlu1 %v1426_v3  ;;  %v1174_v59 = vpop.xlane.xlu0 %1173  ;;  %v2721_v3 = vld [vmem:[%s4430_s2 + $0x28] sm:$0xff] }
 0x223   : > { %v1261_v45 = vmax.f32 %v1174_v59, %v1223_v26  ;;  %1472 = vadd.xlane.f32.xlu0 %v1471_v7 }
 0x224   : > { %v1177_v29 = vpop.xlane.xlu1 %1176 }
 0x225   : > { %v1281_v39 = vsub.f32 %v4563_v21, %v1261_v45  ;;  %v1373_v49 = vsub.f32 %v4564_v57, %v1261_v45  ;;  %v1262_v33 = vmax.f32 %v1177_v29, %v1226_v28  ;;  %v1282_v38 = vsub.f32 %v4565_v11, %v1261_v45  ;;  %v1153_v28 = vld [vmem:[%s4431_s3 + $0x48] sm:$0xff] }
 0x226   : > { %1475 = vadd.xlane.f32.xlu1 %v1474_v50  ;;  %v1180_v6 = vpop.xlane.xlu0 %1179 }
 0x227   : > { %v1374_v47 = vsub.f32 %v2721_v3, %v1262_v33  ;;  %v1321_v26 = vmul.f32 1.442695, %v1281_v39  ;;  %v1283_v59 = vsub.f32 %v3241_v20, %v1262_v33  ;;  %v1263_v7 = vmax.f32 %v1180_v6, %v1229_v62 }
 0x228   : > { %v1393_v29 = vmul.f32 1.442695, %v1373_v49  ;;  %v1284_v45 = vsub.f32 %v3248_v44, %v1262_v33  ;;  %v1323_v11 = vmul.f32 1.442695, %v1282_v38  ;;  %v1637_v39 = vpack.c.bf16 %v1153_v28, %v1152_v34  ;;  %v1154_v44 = vld [vmem:[%s4431_s3 + $0x50] sm:$0xff]  ;;  %v1155_v34 = vld [vmem:[%s4431_s3 + $0x58] sm:$0xff] }
 0x229   : > { %v1395_v50 = vmul.f32 1.442695, %v1374_v47  ;;  %2615 = vpow2.f32 %v1321_v26  ;;  %v1325_v20 = vmul.f32 1.442695, %v1283_v59  ;;  %v1285_v62 = vsub.f32 %v3276_v51, %v1263_v7  ;;  %v2723_v51 = vld [vmem:[%s4430_s2 + $0x38] sm:$0xff] }
 0x22a   : > { %v1183_v21 = vpop.xlane.xlu1 %1182  ;;  %2617 = vpow2.f32 %v1393_v29  ;;  %v1327_v6 = vmul.f32 1.442695, %v1284_v45  ;;  %v1375_v23 = vsub.f32 %v2722_v4, %v1263_v7  ;;  %2431 = vmatprep.subr.msk.bf16.mxu1 %vm1208_vm1, %v1637_v39  ;;  %v1286_v4 = vsub.f32 %v3282_v53, %v1263_v7 }
 0x22b   : > { %v1186_v57 = vpop.xlane.xlu0 %1185  ;;  %v1264_v3 = vmax.f32 %v1183_v21, %v1232_v46  ;;  %2619 = vpow2.f32 %v1395_v50  ;;  %v1329_v46 = vmul.f32 1.442695, %v1285_v62  ;;  %v1638_v26 = vpack.c.bf16 %v1155_v34, %v1154_v44  ;;  %v4566_v21 = vld [vmem:[#allocation13_spill] sm:$0xff]  ;;  %v4568_v62 = vld [vmem:[#allocation16_spill] sm:$0xff] }
 0x22c   : > { %2621 = vpow2.f32 %v1323_v11  ;;  %v1265_v47 = vmax.f32 %v1186_v57, %v3694_v27  ;;  %v1397_v59 = vmul.f32 1.442695, %v1375_v23  ;;  %v1678_v50 = vsel %vm1208_vm1, %v1637_v39, 0  ;;  %v2724_v23 = vld [vmem:[%s4430_s2 + $0x40] sm:$0xff] }
 0x22d   : > { %v1376_v38 = vsub.f32 %v2723_v51, %v1264_v3  ;;  %2623 = vpow2.f32 %v1325_v20  ;;  %v1287_v49 = vsub.f32 %v3291_v10, %v1264_v3  ;;  %v1288_v28 = vsub.f32 %v4566_v21, %v1264_v3  ;;  %v4567_v51 = vld [vmem:[#allocation14_spill] sm:$0xff]  ;;  %2364 = vmatpush3.bf16.xpose.msra.mxu1 %v1678_v50 }
 0x22e   : > { %2625 = vpow2.f32 %v1327_v6  ;;  %v1331_v11 = vmul.f32 1.442695, %v1286_v4  ;;  %v1289_v53 = vsub.f32 %v4567_v51, %v1265_v47  ;;  %2432 = vmatprep.subr.msk.bf16.mxu1 %vm1208_vm1, %v1638_v26  ;;  %v1377_v57 = vsub.f32 %v2724_v23, %v1265_v47 }
 0x22f   : > { %v1189_v0 = vpop.xlane.xlu1 %1188  ;;  %v1192_v33 = vpop.xlane.xlu0 %1191  ;;  %v1399_v29 = vmul.f32 1.442695, %v1376_v38  ;;  %2627 = vpow2.f32 %v1329_v46  ;;  %v1333_v27 = vmul.f32 1.442695, %v1287_v49  ;;  %v1335_v10 = vmul.f32 1.442695, %v1288_v28 }
 0x230   : > { %v1266_v45 = vmax.f32 %v1189_v0, %v3696_v58  ;;  %2629 = vpow2.f32 %v1397_v59  ;;  %v2725_v0 = vld [vmem:[%s4430_s2 + $0x48] sm:$0xff]  ;;  %v1290_v6 = vsub.f32 %v4568_v62, %v1265_v47  ;;  %v1337_v44 = vmul.f32 1.442695, %v1289_v53 }
 0x231   : > { %2631 = vpow2.f32 %v1399_v29  ;;  %v1267_v4 = vmax.f32 %v1192_v33, %v3700_v18  ;;  %v1681_v46 = vsel %vm1208_vm1, %v1638_v26, 0  ;;  %v1401_v59 = vmul.f32 1.442695, %v1377_v57  ;;  %v3792_v33 = vpop.f32.mrb[64].mxu0  ;;  %v4569_v26 = vld [vmem:[#allocation17_spill] sm:$0xff]  ;;  %v2727_v57 = vld [vmem:[%s4430_s2 + $0x58] sm:$0xff] }
 0x232   : > { %v1378_v58 = vsub.f32 %v2725_v0, %v1266_v45  ;;  %2633 = vpow2.f32 %v1331_v11  ;;  %v1291_v38 = vsub.f32 %v3356_v48, %v1266_v45  ;;  %v1292_v21 = vsub.f32 %v3364_v43, %v1266_v45 }
 0x233   : > { %v1195_v7 = vpop.xlane.xlu1 %1194  ;;  %v3767_v3 = vpop.eup %2615  ;;  %2635 = vpow2.f32 %v1333_v27  ;;  %v1339_v51 = vmul.f32 1.442695, %v1290_v6  ;;  %v1293_v45 = vsub.f32 %v4569_v26, %v1267_v4  ;;  %v2726_v27 = vld [vmem:[%s4430_s2 + $0x50] sm:$0xff] }
 0x234   : > { %v1198_v39 = vpop.xlane.xlu0 %1197  ;;  %v3772_v20 = vpop.eup %2617  ;;  %2637 = vpow2.f32 %v1335_v10  ;;  %v1403_v47 = vmul.f32 1.442695, %v1378_v58  ;;  %v1268_v50 = vmax.f32 %v1195_v7, %v3708_v60  ;;  %v1341_v43 = vmul.f32 1.442695, %v1291_v38 }
 0x235   : > { %v3775_v34 = vpop.eup %2619  ;;  %v1477_v48 = vsel %vm1208_vm1, %v3772_v20, 0.0  ;;  %2366 = vmatpush3.bf16.xpose.msra.mxu1 %v1681_v46  ;;  %2639 = vpow2.f32 %v1337_v44  ;;  %v3795_v60 = vpop.f32.mrb[65].mxu0  ;;  %v1343_v7 = vmul.f32 1.442695, %v1292_v21  ;;  %v1379_v10 = vsub.f32 %v2726_v27, %v1267_v4  ;;  %v4570_v44 = vld [vmem:[#allocation18_spill] sm:$0xff] }
 0x236   : > { %v3780_v49 = vpop.eup %2621  ;;  %v1480_v18 = vsel %vm1208_vm1, %v3775_v34, 0.0  ;;  %1478 = vadd.xlane.f32.xlu0 %v1477_v48  ;;  %2641 = vpow2.f32 %v1401_v59  ;;  %v1380_v0 = vsub.f32 %v2727_v57, %v1268_v50  ;;  %v1294_v38 = vsub.f32 %v4570_v44, %v1267_v4  ;;  %v4571_v48 = vld [vmem:[#allocation19_spill] sm:$0xff]  ;;  %v4572_v57 = vld [vmem:[#allocation20_spill] sm:$0xff] }
 0x237   : > { %v1201_v28 = vpop.xlane.xlu1 %1200  ;;  %v3783_v29 = vpop.eup %2623  ;;  %1481 = vadd.xlane.f32.xlu1 %v1480_v18  ;;  %2643 = vpow2.f32 %v1403_v47  ;;  %v1429_v58 = vadd.f32 %v3780_v49, %v3767_v3  ;;  %v1269_v46 = vmax.f32 %v1198_v39, %v3714_v42  ;;  %v1345_v47 = vmul.f32 1.442695, %v1293_v45 }
 0x238   : > { %v3786_v11 = vpop.eup %2625  ;;  %v1204_v53 = vpop.xlane.xlu0 %1203  ;;  %2645 = vpow2.f32 %v1339_v51  ;;  %v1295_v18 = vsub.f32 %v4571_v48, %v1268_v50  ;;  %v1405_v27 = vmul.f32 1.442695, %v1379_v10  ;;  %v1296_v63 = vsub.f32 %v4572_v57, %v1268_v50  ;;  %v4573_v10 = vld [vmem:[#allocation21_spill] sm:$0xff]  ;;  %v1159_v48 = vld [vmem:[%s4431_s3 + $0x78] sm:$0xff] }
 0x239   : > { %v3800_v23 = vpop.eup %2627  ;;  %v1432_v62 = vadd.f32 %v3786_v11, %v3783_v29  ;;  %2647 = vpow2.f32 %v1341_v43  ;;  %v3820_v51 = vmax.f32 %v1201_v28, %v3720_v41  ;;  %v1407_v42 = vmul.f32 1.442695, %v1380_v0  ;;  %v1156_v41 = vld [vmem:[%s4431_s3 + $0x60] sm:$0xff]  ;;  %v1157_v28 = vld [vmem:[%s4431_s3 + $0x68] sm:$0xff] }
 0x23a   : > { %v3809_v6 = vpop.eup %2629  ;;  %1430 = vadd.xlane.f32.xlu0 %v1429_v58  ;;  %2649 = vpow2.f32 %v1343_v7  ;;  %v1347_v43 = vmul.f32 1.442695, %v1294_v38  ;;  %v1297_v45 = vsub.f32 %v3459_v1, %v1269_v46  ;;  %v1349_v50 = vmul.f32 1.442695, %v1295_v18  ;;  %v2728_v1 = vld [vmem:[%s4430_s2 + $0x60] sm:$0xff]  ;;  %v1158_v38 = vld [vmem:[%s4431_s3 + $0x70] sm:$0xff] }
 0x23b   : > { %v1207_v59 = vpop.xlane.xlu1 %1206  ;;  %v3813_v21 = vpop.eup %2631  ;;  %1433 = vadd.xlane.f32.xlu1 %v1432_v62  ;;  %v1483_v58 = vsel %vm1208_vm1, %v3809_v6, 0.0  ;;  %2651 = vpow2.f32 %v1345_v47  ;;  %v1298_v0 = vsub.f32 %v4573_v10, %v1269_v46  ;;  %v1381_v62 = vsub.f32 %v2728_v1, %v1269_v46  ;;  %v4574_v18 = vld [vmem:[#allocation15_spill] sm:$0xff] }
 0x23c   : > { %v3816_v26 = vpop.eup %2633  ;;  %v1253_v39 = vpop.xlane.xlu0 %1252  ;;  %v1486_v7 = vsel %vm1208_vm1, %v3813_v21, 0.0  ;;  %2653 = vpow2.f32 %v1405_v27  ;;  %v1351_v47 = vmul.f32 1.442695, %v1296_v63  ;;  %v1382_v57 = vsub.f32 %v4574_v18, %v3820_v51 }
 0x23d   : > { %v3822_v4 = vpop.eup %2635  ;;  %v3849_v10 = vmax.f32 %v1204_v53, %v1253_v39  ;;  %2655 = vpow2.f32 %v1407_v42  ;;  %v1435_v46 = vadd.f32 %v3816_v26, %v3800_v23  ;;  %v1353_v63 = vmul.f32 1.442695, %v1297_v45 }
 0x23e   : > { %v3824_v44 = vpop.eup %2637  ;;  %1484 = vadd.xlane.f32.xlu0 %v1483_v58  ;;  %2657 = vpow2.f32 %v1347_v43  ;;  %v1640_v27 = vpack.c.bf16 %v1159_v48, %v1158_v38  ;;  %v1299_v53 = vsub.f32 %v3473_v15, %v3820_v51  ;;  %v4577_v43 = vld [vmem:[#allocation22_spill] sm:$0xff]  ;;  %v1355_v15 = vmul.f32 1.442695, %v1298_v0 }
 0x23f   : > { %1487 = vadd.xlane.f32.xlu1 %v1486_v7  ;;  %v1256_v35 = vpop.xlane.xlu1 %1255  ;;  %v3851_v9 = vpop.eup %2639  ;;  %v1438_v58 = vadd.f32 %v3824_v44, %v3822_v4  ;;  %v1639_v7 = vpack.c.bf16 %v1157_v28, %v1156_v41  ;;  %2659 = vpow2.f32 %v1349_v50  ;;  %v1409_v41 = vmul.f32 1.442695, %v1381_v62 }
 0x240   : > { %4575 = vst [vmem:[#allocation8_spill] sm:$0xff] %v3851_v9  ;;  %v3857_v1 = vpop.eup %2641  ;;  %v3863_v39 = vmax.f32 %v1207_v59, %v1256_v35  ;;  %2661 = vpow2.f32 %v1351_v47  ;;  %v1300_v45 = vsub.f32 %v4577_v43, %v3820_v51  ;;  %v3871_v28 = vpop.f32.mrb[66].mxu0  ;;  %v1411_v35 = vmul.f32 1.442695, %v1382_v57  ;;  %v4579_v59 = vld [vmem:[#allocation23_spill] sm:$0xff]  ;;  %v4581_v51 = vld [vmem:[#allocation25_spill] sm:$0xff] }
 0x241   : > { %v3859_v37 = vpop.eup %2643  ;;  %v1684_v42 = vsel %vm1208_vm1, %v1639_v7, 0  ;;  %2433 = vmatprep.subr.msk.bf16.mxu1 %vm1208_vm1, %v1639_v7  ;;  %v1301_v38 = vsub.f32 %v4579_v59, %v3849_v10  ;;  %v805_v47 = vpop.f32.mrb[67].mxu0  ;;  %2663 = vpow2.f32 %v1353_v63  ;;  %v1357_v7 = vmul.f32 1.442695, %v1299_v53 }
 0x242   : > { %1436 = vadd.xlane.f32.xlu0 %v1435_v46  ;;  %v3866_v18 = vpop.eup %2645  ;;  %2368 = vmatpush3.bf16.xpose.msra.mxu1 %v1684_v42  ;;  %v1302_v46 = vsub.f32 %v4581_v51, %v3849_v10  ;;  %v1492_v0 = vsel %vm1208_vm1, %v3859_v37, 0.0  ;;  %v1610_v57 = vpack.c.bf16 %v805_v47, %v3795_v60  ;;  %v1303_v42 = vsub.f32 %v3518_v40, %v3863_v39 }
 0x243   : > { %1439 = vadd.xlane.f32.xlu1 %v1438_v58  ;;  %4576 = vst [vmem:[#allocation5_spill] sm:$0xff] %v3866_v18  ;;  %v3873_v50 = vpop.eup %2647  ;;  %v1489_v58 = vsel %vm1208_vm1, %v3857_v1, 0.0  ;;  %2434 = vmatprep.subr.msk.bf16.mxu1 %vm1208_vm1, %v1640_v27  ;;  %2665 = vpow2.f32 %v1409_v41  ;;  %v1359_v43 = vmul.f32 1.442695, %v1300_v45  ;;  %v1304_v59 = vsub.f32 %v3524_v12, %v3863_v39 }
 0x244   : > { %4578 = vst [vmem:[#allocation9_spill] sm:$0xff] %v3873_v50  ;;  %v3879_v62 = vpop.eup %2649  ;;  %2667 = vpow2.f32 %v1411_v35  ;;  %v1361_v48 = vmul.f32 1.442695, %v1301_v38  ;;  %v1441_v14 = vadd.f32 %v3866_v18, %v3851_v9  ;;  %v1363_v40 = vmul.f32 1.442695, %v1302_v46  ;;  %v4586_v35 = vld [vmem:[#allocation24_spill] sm:$0xff] }
 0x245   : > { %4580 = vst [vmem:[#allocation10_spill] sm:$0xff] %v3879_v62  ;;  %v3893_v51 = vpop.eup %2651  ;;  %v1444_v60 = vadd.f32 %v3879_v62, %v3873_v50  ;;  %2669 = vpow2.f32 %v1355_v15  ;;  %v1687_v53 = vsel %vm1208_vm1, %v1640_v27, 0  ;;  %v1365_v12 = vmul.f32 1.442695, %v1303_v42 }
 0x246   : > { %1490 = vadd.xlane.f32.xlu0 %v1489_v58  ;;  %4582 = vst [vmem:[#allocation6_spill] sm:$0xff] %v3893_v51  ;;  %v3899_v63 = vpop.eup %2653  ;;  %2671 = vpow2.f32 %v1357_v7  ;;  %v1383_v38 = vsub.f32 %v4586_v35, %v3849_v10  ;;  %v1367_v47 = vmul.f32 1.442695, %v1304_v59  ;;  %v3908_v58 = vpop.f32.mrb[68].mxu0  ;;  %v1384_v27 = vsub.f32 %v3537_v19, %v3863_v39 }
 0x247   : > { %1493 = vadd.xlane.f32.xlu1 %v1492_v0  ;;  %4583 = vst [vmem:[#allocation11_spill] sm:$0xff] %v3899_v63  ;;  %v3902_v41 = vpop.eup %2655  ;;  %2673 = vpow2.f32 %v1359_v43  ;;  %v3914_v15 = vpop.f32.mrb[69].mxu0  ;;  %v1495_v46 = vsel %vm1208_vm1, %v3899_v63, 0.0 }
 0x248   : > { %4584 = vst [vmem:[#allocation7_spill] sm:$0xff] %v3902_v41  ;;  %v3904_v45 = vpop.eup %2657  ;;  %2675 = vpow2.f32 %v1361_v48  ;;  %v1498_v10 = vsel %vm1208_vm1, %v3902_v41, 0.0  ;;  %v3922_v7 = vpop.f32.mrb[70].mxu0  ;;  %v1413_v48 = vmul.f32 1.442695, %v1383_v38 }
 0x249   : > { %4585 = vst [vmem:[#allocation12_spill] sm:$0xff] %v3904_v45  ;;  %v3910_v0 = vpop.eup %2659  ;;  %2677 = vpow2.f32 %v1363_v40  ;;  %v3926_v39 = vpop.f32.mrb[71].mxu0  ;;  %v1415_v59 = vmul.f32 1.442695, %v1384_v27 }
 0x24a   : > { %1442 = vadd.xlane.f32.xlu0 %v1441_v14  ;;  %4587 = vst [vmem:[#allocation13_spill] sm:$0xff] %v3910_v0  ;;  %2370 = vmatpush3.bf16.xpose.msra.mxu1 %v1687_v53  ;;  %v3916_v14 = vpop.eup %2661  ;;  %2679 = vpow2.f32 %v1365_v12  ;;  %v3942_v35 = vpop.f32.mrb[72].mxu0 }
 0x24b   : > { %1445 = vadd.xlane.f32.xlu1 %v1444_v60  ;;  %4588 = vst [vmem:[#allocation14_spill] sm:$0xff] %v3916_v14  ;;  %1786 = vmatprep.subr.bf16.mxu1 %v1610_v57  ;;  %2681 = vpow2.f32 %v1367_v47  ;;  %v3930_v43 = vpop.eup %2663  ;;  %v1447_v57 = vadd.f32 %v3904_v45, %v3893_v51  ;;  %v1450_v60 = vadd.f32 %v3916_v14, %v3910_v0  ;;  %v3946_v47 = vpop.f32.mrb[73].mxu0 }
 0x24c   : > { %4589 = vst [vmem:[#allocation16_spill] sm:$0xff] %v3930_v43  ;;  %2683 = vpow2.f32 %v1413_v48 }
 0x24d   : > { %v3936_v40 = vpop.eup %2665  ;;  %2685 = vpow2.f32 %v1415_v59 }
 0x24e   : > { %1496 = vadd.xlane.f32.xlu0 %v1495_v46  ;;  %4590 = vst [vmem:[#allocation17_spill] sm:$0xff] %v3936_v40  ;;  %v3938_v53 = vpop.eup %2667  ;;  %v1501_v46 = vsel %vm1208_vm1, %v3936_v40, 0.0 }
 0x24f   : > { %1499 = vadd.xlane.f32.xlu1 %v1498_v10  ;;  %4591 = vst [vmem:[#allocation18_spill] sm:$0xff] %v3938_v53  ;;  %v3940_v12 = vpop.eup %2669  ;;  %v1504_v10 = vsel %vm1208_vm1, %v3938_v53, 0.0 }
 0x250   : > { %4592 = vst [vmem:[#allocation19_spill] sm:$0xff] %v3940_v12  ;;  %v3944_v38 = vpop.eup %2671  ;;  %v1453_v25 = vadd.f32 %v3940_v12, %v3930_v43 }
 0x251   : > { %4593 = vst [vmem:[#allocation20_spill] sm:$0xff] %v3944_v38  ;;  %v3948_v27 = vpop.eup %2673 }
 0x252   : > { %1448 = vadd.xlane.f32.xlu0 %v1447_v57  ;;  %4594 = vst [vmem:[#allocation21_spill] sm:$0xff] %v3948_v27  ;;  %v3954_v57 = vpop.f32.mrb[74].mxu0  ;;  %v1456_v16 = vadd.f32 %v3948_v27, %v3944_v38 }
 0x253   : > { %1451 = vadd.xlane.f32.xlu1 %v1450_v60  ;;  %v3956_v60 = vpop.eup %2675  ;;  %v3960_v59 = vpop.f32.mrb[75].mxu0 }
 0x254   : > { %4595 = vst [vmem:[#allocation15_spill] sm:$0xff] %v3956_v60  ;;  %v3962_v19 = vpop.eup %2677 }
 0x255   : > { %4596 = vst [vmem:[#allocation22_spill] sm:$0xff] %v3962_v19  ;;  %v3966_v32 = vpop.eup %2679  ;;  %v1459_v48 = vadd.f32 %v3962_v19, %v3956_v60 }
 0x256   : > { %1502 = vadd.xlane.f32.xlu0 %v1501_v46  ;;  %4597 = vst [vmem:[#allocation23_spill] sm:$0xff] %v3966_v32  ;;  %v3972_v46 = vpop.eup %2681 }
 0x257   : > { %1505 = vadd.xlane.f32.xlu1 %v1504_v10  ;;  %4598 = vst [vmem:[#allocation25_spill] sm:$0xff] %v3972_v46  ;;  %v3974_v10 = vpop.f32.mrb[76].mxu0  ;;  %v1462_v42 = vadd.f32 %v3972_v46, %v3966_v32  ;;  %v3982_v54 = vpop.eup %2683 }
 0x258   : > { %v3980_v30 = vpop.f32.mrb[77].mxu0  ;;  %4599 = vst [vmem:[#allocation24_spill] sm:$0xff] %v3982_v54  ;;  %v3986_v43 = vpop.eup %2685  ;;  %v1507_v32 = vsel %vm1208_vm1, %v3982_v54, 0.0 }
 0x259   : > { %v3984_v17 = vpop.f32.mrb[78].mxu0  ;;  %4600 = vst [vmem:[#allocation42_spill] sm:$0xff] %v3986_v43  ;;  %v1510_v46 = vsel %vm1208_vm1, %v3986_v43, 0.0 }
 0x25a   : > { %1454 = vadd.xlane.f32.xlu0 %v1453_v25  ;;  %v3990_v25 = vpop.f32.mrb[79].mxu0 }
 0x25b   : > { %1457 = vadd.xlane.f32.xlu1 %v1456_v16 }
 0x25e   : > { %1460 = vadd.xlane.f32.xlu0 %v1459_v48 }
 0x25f   : > { %1463 = vadd.xlane.f32.xlu1 %v1462_v42 }
 0x262   : > { %1508 = vadd.xlane.f32.xlu0 %v1507_v32 }
 0x263   : > { %1511 = vadd.xlane.f32.xlu1 %v1510_v46 }
 0x267   : > { %v3998_v19 = vpop.f32.mrb[80].mxu0 }
 0x268   : > { %v4000_v48 = vpop.f32.mrb[81].mxu0 }
 0x269   : > { %v4002_v42 = vpop.f32.mrb[82].mxu0 }
 0x26a   : > { %v4006_v38 = vpop.f32.mrb[83].mxu0 }
 0x270   : > { %v4010_v54 = vpop.f32.mrb[84].mxu0 }
 0x271   : > { %4601 = vst [vmem:[#allocation43_spill] sm:$0xff] %v4010_v54  ;;  %v4012_v27 = vpop.f32.mrb[85].mxu0 }
 0x272   : > { %v4014_v32 = vpop.f32.mrb[86].mxu0 }
 0x273   : > { %4602 = vst [vmem:[#allocation44_spill] sm:$0xff] %v4014_v32  ;;  %v4018_v43 = vpop.f32.mrb[87].mxu0 }
 0x27a   : > { %v4022_v16 = vpop.f32.mrb[88].mxu0 }
 0x27b   : > { %4603 = vst [vmem:[#allocation45_spill] sm:$0xff] %v4022_v16  ;;  %v4024_v12 = vpop.f32.mrb[89].mxu0 }
 0x27c   : > { %4604 = vst [vmem:[#allocation46_spill] sm:$0xff] %v4024_v12  ;;  %v4026_v40 = vpop.f32.mrb[90].mxu0 }
 0x27d   : > { %4605 = vst [vmem:[#allocation47_spill] sm:$0xff] %v4026_v40  ;;  %v4030_v51 = vpop.f32.mrb[91].mxu0 }
 0x27e   : > { %4606 = vst [vmem:[#allocation48_spill] sm:$0xff] %v4030_v51 }
 0x282   : > { %v4034_v46 = vpop.f32.mrb[92].mxu0 }
 0x283   : > { %4607 = vst [vmem:[#allocation49_spill] sm:$0xff] %v4034_v46  ;;  %v4036_v14 = vpop.f32.mrb[93].mxu0 }
 0x284   : > { %v4038_v45 = vpop.f32.mrb[94].mxu0 }
 0x285   : > { %4608 = vst [vmem:[#allocation50_spill] sm:$0xff] %v4038_v45  ;;  %v4042_v41 = vpop.f32.mrb[95].mxu0 }
 0x29e   : > { %v1467_v60 = vpop.xlane.xlu0 %1466 }
 0x2a2   : > { %v1470_v16 = vpop.xlane.xlu1 %1469  ;;  %v1419_v40 = vpop.xlane.xlu0 %1418 }
 0x2a3   : > { %v1513_v9 = vadd.f32 %v1467_v60, %v1419_v40 }
 0x2a5   : > { %2687 = vrcp.f32 %v1513_v9 }
 0x2a6   : > { %v1422_v0 = vpop.xlane.xlu1 %1421 }
 0x2a7   : > { %v1514_v12 = vadd.f32 %v1470_v16, %v1422_v0  ;;  %v4611_v16 = vpack.c.bf16 %v3922_v7, %v3908_v58  ;;  %v4614_v58 = vpack.c.bf16 %v3990_v25, %v3980_v30 }
 0x2a9   : > { %2689 = vrcp.f32 %v1514_v12 }
 0x2ac   : > { %v1425_v51 = vpop.xlane.xlu0 %1424 }
 0x2af   : > { %v1428_v54 = vpop.xlane.xlu1 %1427  ;;  %v2688_v62 = vpop.eup %2687 }
 0x2b0   : > { %v1473_v32 = vpop.xlane.xlu0 %1472  ;;  %v1577_v18 = vmul.f32 %v2688_v62, %v3676_v22  ;;  %v4048_v63 = vmul.f32 %v2688_v62, %v3680_v55  ;;  %v4051_v40 = vmul.f32 %v2688_v62, %v3678_v52 }
 0x2b1   : > { %v1515_v50 = vadd.f32 %v1473_v32, %v1425_v51 }
 0x2b3   : > { %2691 = vrcp.f32 %v1515_v50  ;;  %v1476_v53 = vpop.xlane.xlu1 %1475  ;;  %v2690_v45 = vpop.eup %2689 }
 0x2b4   : > { %v1516_v46 = vadd.f32 %v1476_v53, %v1428_v54  ;;  %v1578_v9 = vmul.f32 %v2690_v45, %v3686_v61  ;;  %v4055_v0 = vmul.f32 %v2690_v45, %v3688_v31  ;;  %v4058_v51 = vmul.f32 %v2690_v45, %v3684_v56 }
 0x2b6   : > { %2693 = vrcp.f32 %v1516_v46  ;;  %v1625_v50 = vpack.c.bf16 %v1578_v9, %v1577_v18  ;;  %v1594_v54 = vpack.c.bf16 %v4055_v0, %v4048_v63  ;;  %v1593_v22 = vpack.c.bf16 %v4058_v51, %v4051_v40 }
 0x2b7   : > { %v4612_v9 = vpack.c.bf16 %v3960_v59, %v3946_v47 }
 0x2b8   : > { %2371 = vmatprep.mubr.msk.bf16.mxu1 %vm1208_vm1, %v1625_v50  ;;  %v4613_v50 = vpack.c.bf16 %v3954_v57, %v3942_v35 }
 0x2bd   : > { %v2692_v52 = vpop.eup %2691 }
 0x2be   : > { %v1579_v62 = vmul.f32 %v2692_v52, %v3706_v36  ;;  %v4067_v61 = vmul.f32 %v2692_v52, %v3704_v5  ;;  %v4074_v18 = vmul.f32 %v2692_v52, %v3702_v24  ;;  %v4609_v5 = vpack.c.bf16 %v3871_v28, %v3792_v33 }
 0x2bf   : > { %v4610_v24 = vpack.c.bf16 %v3926_v39, %v3914_v15 }
 0x2c0   : > { %v2694_v55 = vpop.eup %2693 }
 0x2c1   : > { %v1580_v31 = vmul.f32 %v2694_v55, %v3722_v8  ;;  %v4071_v56 = vmul.f32 %v2694_v55, %v3716_v2  ;;  %v4077_v45 = vmul.f32 %v2694_v55, %v3712_v13 }
 0x2c3   : > { %v1626_v53 = vpack.c.bf16 %v1580_v31, %v1579_v62  ;;  %v1596_v12 = vpack.c.bf16 %v4071_v56, %v4067_v61  ;;  %v1595_v36 = vpack.c.bf16 %v4077_v45, %v4074_v18  ;;  %v1479_v2 = vpop.xlane.xlu0 %1478 }
 0x2c4   : > { %v1482_v13 = vpop.xlane.xlu1 %1481 }
 0x2c5   : > { %2372 = vmatmul.mubr.msk.bf16.vlgmr.msra.gmra.mrb[0].mxu1 %vm1208_vm1, %v1626_v53 }
 0x2c6   : > { %1787 = vmatpush1.bf16.xpose.msra.mxu1 %v4609_v5 }
 0x2c7   : > { %1788 = vmatprep.subr.bf16.mxu1 %v4610_v24  ;;  %v1431_v8 = vpop.xlane.xlu0 %1430  ;;  %v4615_v24 = vpack.c.bf16 %v3984_v17, %v3974_v10 }
 0x2c8   : > { %v1434_v60 = vpop.xlane.xlu1 %1433  ;;  %v1517_v32 = vadd.f32 %v1479_v2, %v1431_v8 }
 0x2c9   : > { %v1518_v46 = vadd.f32 %v1482_v13, %v1434_v60 }
 0x2ca   : > { %2695 = vrcp.f32 %v1517_v32 }
 0x2cb   : > { %2697 = vrcp.f32 %v1518_v46  ;;  %v1485_v33 = vpop.xlane.xlu0 %1484 }
 0x2cc   : > { %v1488_v28 = vpop.xlane.xlu1 %1487 }
 0x2ce   : > { %1789 = vmatpush1.bf16.xpose.msra.mxu1 %v4611_v16 }
 0x2cf   : > { %1790 = vmatprep.subr.bf16.mxu1 %v4612_v9  ;;  %v1437_v15 = vpop.xlane.xlu0 %1436 }
 0x2d0   : > { %v1440_v39 = vpop.xlane.xlu1 %1439  ;;  %v1519_v52 = vadd.f32 %v1485_v33, %v1437_v15  ;;  %v4617_v33 = vpack.c.bf16 %v4002_v42, %v3998_v19 }
 0x2d1   : > { %v1520_v55 = vadd.f32 %v1488_v28, %v1440_v39 }
 0x2d2   : > { %2699 = vrcp.f32 %v1519_v52 }
 0x2d3   : > { %2701 = vrcp.f32 %v1520_v55  ;;  %v1491_v7 = vpop.xlane.xlu0 %1490  ;;  %v4620_v55 = vld [vmem:[#allocation10_spill] sm:$0xff] }
 0x2d4   : > { %v1494_v47 = vpop.xlane.xlu1 %1493  ;;  %v2696_v59 = vpop.eup %2695 }
 0x2d5   : > { %v2698_v62 = vpop.eup %2697  ;;  %v1581_v31 = vmul.f32 %v2696_v59, %v3772_v20  ;;  %v4105_v5 = vmul.f32 %v2696_v59, %v3780_v49  ;;  %v4117_v2 = vmul.f32 %v2696_v59, %v3767_v3  ;;  %v4616_v49 = vpack.c.bf16 %v4006_v38, %v4000_v48 }
 0x2d6   : > { %1791 = vmatpush1.bf16.xpose.msra.mxu1 %v4613_v50  ;;  %v1582_v53 = vmul.f32 %v2698_v62, %v3775_v34  ;;  %v4108_v35 = vmul.f32 %v2698_v62, %v3786_v11  ;;  %v4111_v57 = vmul.f32 %v2698_v62, %v3783_v29 }
 0x2d7   : > { %1792 = vmatprep.subr.bf16.mxu1 %v4614_v58  ;;  %v1443_v30 = vpop.xlane.xlu0 %1442 }
 0x2d8   : > { %v1446_v25 = vpop.xlane.xlu1 %1445  ;;  %v1521_v20 = vadd.f32 %v1491_v7, %v1443_v30  ;;  %v1627_v13 = vpack.c.bf16 %v1582_v53, %v1581_v31  ;;  %v1598_v29 = vpack.c.bf16 %v4108_v35, %v4105_v5  ;;  %v1597_v11 = vpack.c.bf16 %v4111_v57, %v4117_v2  ;;  %v4621_v7 = vld [vmem:[#allocation9_spill] sm:$0xff]  ;;  %v4622_v31 = vld [vmem:[#allocation44_spill] sm:$0xff]  ;;  %v4623_v53 = vld [vmem:[#allocation43_spill] sm:$0xff] }
 0x2d9   : > { %v1522_v34 = vadd.f32 %v1494_v47, %v1446_v25  ;;  %v4624_v30 = vpack.c.bf16 %v4622_v31, %v4623_v53  ;;  %v4625_v25 = vld [vmem:[#allocation8_spill] sm:$0xff] }
 0x2da   : > { %2703 = vrcp.f32 %v1521_v20  ;;  %2375 = vmatprep.mubr.msk.bf16.mxu1 %vm1208_vm1, %v1627_v13  ;;  %v4627_v13 = vld [vmem:[#allocation46_spill] sm:$0xff] }
 0x2db   : > { %2705 = vrcp.f32 %v1522_v34  ;;  %v1497_v17 = vpop.xlane.xlu0 %1496  ;;  %v4626_v34 = vld [vmem:[#allocation48_spill] sm:$0xff] }
 0x2dc   : > { %v1500_v3 = vpop.xlane.xlu1 %1499  ;;  %v2700_v10 = vpop.eup %2699 }
 0x2dd   : > { %v2702_v8 = vpop.eup %2701  ;;  %v1583_v60 = vmul.f32 %v2700_v10, %v3809_v6  ;;  %v4130_v38 = vmul.f32 %v2700_v10, %v3816_v26  ;;  %v4142_v28 = vmul.f32 %v2700_v10, %v3800_v23  ;;  %v4618_v26 = vpack.c.bf16 %v4018_v43, %v4012_v27  ;;  %v4619_v43 = vld [vmem:[#allocation5_spill] sm:$0xff] }
 0x2de   : > { %1793 = vmatpush1.bf16.xpose.msra.mxu1 %v4615_v24  ;;  %v1584_v16 = vmul.f32 %v2702_v8, %v3813_v21  ;;  %v4133_v48 = vmul.f32 %v2702_v8, %v3824_v44  ;;  %v4136_v32 = vmul.f32 %v2702_v8, %v3822_v4 }
 0x2df   : > { %1794 = vmatprep.subr.bf16.mxu1 %v4616_v49  ;;  %v1449_v46 = vpop.xlane.xlu0 %1448  ;;  %v4628_v49 = vpack.c.bf16 %v4626_v34, %v4627_v13  ;;  %v4641_v34 = vld [vmem:[#allocation18_spill] sm:$0xff] }
 0x2e0   : > { %v1452_v9 = vpop.xlane.xlu1 %1451  ;;  %v1523_v6 = vadd.f32 %v1497_v17, %v1449_v46  ;;  %v1628_v15 = vpack.c.bf16 %v1584_v16, %v1583_v60  ;;  %v1600_v4 = vpack.c.bf16 %v4133_v48, %v4130_v38  ;;  %v1599_v44 = vpack.c.bf16 %v4136_v32, %v4142_v28  ;;  %v4629_v46 = vld [vmem:[#allocation11_spill] sm:$0xff]  ;;  %v1883_v32 = vld [vmem:[%s4434_s6] sm:$0xff] }
 0x2e1   : > { %v1524_v21 = vadd.f32 %v1500_v3, %v1452_v9 }
 0x2e2   : > { %2707 = vrcp.f32 %v1523_v6  ;;  %2376 = vmatmul.mubr.msk.bf16.gmra.mrb[4].mxu1 %vm1208_vm1, %v1628_v15 }
 0x2e3   : > { %2709 = vrcp.f32 %v1524_v21  ;;  %v1503_v19 = vpop.xlane.xlu0 %1502  ;;  %v4631_v21 = vld [vmem:[#allocation12_spill] sm:$0xff] }
 0x2e4   : > { %v1506_v23 = vpop.xlane.xlu1 %1505  ;;  %v2704_v42 = vpop.eup %2703 }
 0x2e5   : > { %v2706_v39 = vpop.eup %2705  ;;  %v1585_v50 = vmul.f32 %v2704_v42, %v3857_v1  ;;  %v4155_v27 = vmul.f32 %v2704_v42, %v4619_v43  ;;  %v4167_v24 = vmul.f32 %v2704_v42, %v4625_v25  ;;  %v4635_v43 = vld [vmem:[#allocation45_spill] sm:$0xff] }
 0x2e6   : > { %1795 = vmatpush1.bf16.xpose.msra.mxu1 %v4617_v33  ;;  %v1586_v52 = vmul.f32 %v2706_v39, %v3859_v37  ;;  %v4158_v58 = vmul.f32 %v2706_v39, %v4620_v55  ;;  %v4161_v47 = vmul.f32 %v2706_v39, %v4621_v7  ;;  %v4630_v33 = vld [vmem:[#allocation7_spill] sm:$0xff]  ;;  %v4637_v55 = vld [vmem:[#allocation6_spill] sm:$0xff] }
 0x2e7   : > { %1796 = vmatprep.subr.bf16.mxu1 %v4618_v26  ;;  %v1455_v59 = vpop.xlane.xlu0 %1454  ;;  %v4632_v26 = vld [vmem:[#allocation14_spill] sm:$0xff] }
 0x2e8   : > { %v1458_v62 = vpop.xlane.xlu1 %1457  ;;  %v1525_v1 = vadd.f32 %v1503_v19, %v1455_v59  ;;  %v1629_v20 = vpack.c.bf16 %v1586_v52, %v1585_v50  ;;  %v1602_v17 = vpack.c.bf16 %v4158_v58, %v4155_v27  ;;  %v1601_v3 = vpack.c.bf16 %v4161_v47, %v4167_v24  ;;  %v4634_v52 = vld [vmem:[#allocation47_spill] sm:$0xff]  ;;  %v4639_v24 = vld [vmem:[#allocation17_spill] sm:$0xff] }
 0x2e9   : > { %v1526_v37 = vadd.f32 %v1506_v23, %v1458_v62  ;;  %v4633_v23 = vld [vmem:[#allocation13_spill] sm:$0xff]  ;;  %v4636_v27 = vpack.c.bf16 %v4634_v52, %v4635_v43  ;;  %v4638_v62 = vpack.c.bf16 %v4042_v41, %v4036_v14  ;;  %v4644_v41 = vld [vmem:[#allocation20_spill] sm:$0xff] }
 0x2ea   : > { %2711 = vrcp.f32 %v1525_v1  ;;  %2379 = vmatprep.mubr.msk.bf16.mxu1 %vm1208_vm1, %v1629_v20  ;;  %v4651_v43 = vld [vmem:[#allocation25_spill] sm:$0xff] }
 0x2eb   : > { %2713 = vrcp.f32 %v1526_v37  ;;  %v1461_v10 = vpop.xlane.xlu0 %1460  ;;  %v4640_v37 = vld [vmem:[#allocation19_spill] sm:$0xff] }
 0x2ec   : > { %v1464_v8 = vpop.xlane.xlu1 %1463  ;;  %v2708_v60 = vpop.eup %2707 }
 0x2ed   : > { %v2710_v16 = vpop.eup %2709  ;;  %v1587_v9 = vmul.f32 %v2708_v60, %v4629_v46  ;;  %v1566_v15 = vmul.f32 %v2708_v60, %v4631_v21  ;;  %v1565_v58 = vmul.f32 %v2708_v60, %v4637_v55  ;;  %v4646_v46 = vld [vmem:[#allocation49_spill] sm:$0xff]  ;;  %v4652_v55 = vld [vmem:[#allocation15_spill] sm:$0xff] }
 0x2ee   : > { %1797 = vmatpush1.bf16.xpose.msra.mxu1 %v4624_v30  ;;  %v1588_v6 = vmul.f32 %v2710_v16, %v4630_v33  ;;  %v1568_v19 = vmul.f32 %v2710_v16, %v4632_v26  ;;  %v1567_v42 = vmul.f32 %v2710_v16, %v4633_v23  ;;  %v4645_v16 = vld [vmem:[#allocation50_spill] sm:$0xff] }
 0x2ef   : > { %1798 = vmatprep.subr.bf16.mxu1 %v4628_v49  ;;  %v1509_v39 = vpop.xlane.xlu0 %1508  ;;  %v4642_v49 = vld [vmem:[#allocation21_spill] sm:$0xff] }
 0x2f0   : > { %v1512_v50 = vpop.xlane.xlu1 %1511  ;;  %v1527_v7 = vadd.f32 %v1509_v39, %v1461_v10  ;;  %v1630_v59 = vpack.c.bf16 %v1588_v6, %v1587_v9  ;;  %v1604_v31 = vpack.c.bf16 %v1568_v19, %v1566_v15  ;;  %v1603_v53 = vpack.c.bf16 %v1567_v42, %v1565_v58  ;;  %v4648_v19 = vld [vmem:[#allocation24_spill] sm:$0xff]  ;;  %v4649_v42 = vld [vmem:[#allocation22_spill] sm:$0xff] }
 0x2f1   : > { %v1528_v47 = vadd.f32 %v1512_v50, %v1464_v8  ;;  %v4643_v8 = vld [vmem:[#allocation16_spill] sm:$0xff]  ;;  %v4647_v9 = vpack.c.bf16 %v4645_v16, %v4646_v46  ;;  %v4650_v50 = vld [vmem:[#allocation42_spill] sm:$0xff]  ;;  %v1887_v46 = vld [vmem:[%s4434_s6 + $0x20] sm:$0xff] }
 0x2f2   : > { %2715 = vrcp.f32 %v1527_v7  ;;  %2380 = vmatmul.mubr.msk.bf16.gmra.mrb[8].mxu1 %vm1208_vm1, %v1630_v59  ;;  %v4653_v7 = vld [vmem:[#allocation23_spill] sm:$0xff] }
 0x2f3   : > { %2717 = vrcp.f32 %v1528_v47 }
 0x2f4   : > { %v2712_v30 = vpop.eup %2711 }
 0x2f5   : > { %v2714_v25 = vpop.eup %2713  ;;  %v1589_v1 = vmul.f32 %v2712_v30, %v4639_v24  ;;  %v1570_v20 = vmul.f32 %v2712_v30, %v4640_v37  ;;  %v1569_v60 = vmul.f32 %v2712_v30, %v4643_v8  ;;  %v1885_v37 = vld [vmem:[%s4434_s6 + $0x10] sm:$0xff] }
 0x2f6   : > { %1799 = vmatpush1.bf16.xpose.msra.mxu1 %v4636_v27  ;;  %v1590_v13 = vmul.f32 %v2714_v25, %v4641_v34  ;;  %v1572_v10 = vmul.f32 %v2714_v25, %v4642_v49  ;;  %v1571_v14 = vmul.f32 %v2714_v25, %v4644_v41  ;;  %v1886_v34 = vld [vmem:[%s4434_s6 + $0x18] sm:$0xff] }
 0x2f7   : > { %1800 = vmatprep.subr.bf16.mxu1 %v4638_v62 }
 0x2f8   : > { %v1631_v33 = vpack.c.bf16 %v1590_v13, %v1589_v1  ;;  %v1606_v6 = vpack.c.bf16 %v1572_v10, %v1570_v20  ;;  %v1605_v21 = vpack.c.bf16 %v1571_v14, %v1569_v60 }
 0x2fa   : > { %2383 = vmatprep.mubr.msk.bf16.mxu1 %vm1208_vm1, %v1631_v33  ;;  %v1888_v33 = vld [vmem:[%s4434_s6 + $0x28] sm:$0xff] }
 0x2fc   : > { %v2716_v15 = vpop.eup %2715 }
 0x2fd   : > { %v2718_v26 = vpop.eup %2717  ;;  %v1591_v23 = vmul.f32 %v2716_v15, %v4648_v19  ;;  %v1574_v39 = vmul.f32 %v2716_v15, %v4649_v42  ;;  %v1573_v58 = vmul.f32 %v2716_v15, %v4652_v55 }
 0x2fe   : > { %1801 = vmatpush1.bf16.xpose.msra.mxu1 %v4647_v9  ;;  %v1592_v52 = vmul.f32 %v2718_v26, %v4650_v50  ;;  %v1576_v27 = vmul.f32 %v2718_v26, %v4651_v43  ;;  %v1575_v47 = vmul.f32 %v2718_v26, %v4653_v7  ;;  %v1889_v50 = vld [vmem:[%s4434_s6 + $0x30] sm:$0xff]  ;;  %v1890_v43 = vld [vmem:[%s4434_s6 + $0x38] sm:$0xff] }
 0x300   : > { %v1632_v59 = vpack.c.bf16 %v1592_v52, %v1591_v23  ;;  %v1608_v62 = vpack.c.bf16 %v1576_v27, %v1574_v39  ;;  %v1607_v30 = vpack.c.bf16 %v1575_v47, %v1573_v58 }
 0x302   : > { %2384 = vmatmul.mubr.msk.bf16.gmra.mrb[12].mxu1 %vm1208_vm1, %v1632_v59 }
 0x303   : > { %1818 = vmatprep.mubr.bf16.mxu1 %v1594_v54  ;;  %v2503_v54 = vld [vmem:[%s4432_s4] sm:$0xff]  }
 0x30a   : > { %1819 = vmatmul.mubr.bf16.vlgmr.msra.gmra.mrb[16].mxu1 %v1593_v22 }
 0x30b   : > { %1826 = vmatprep.mubr.bf16.mxu1 %v1596_v12 }
 0x312   : > { %1827 = vmatmul.mubr.bf16.gmra.mrb[20].mxu1 %v1595_v36 }
 0x313   : > { %1834 = vmatprep.mubr.bf16.mxu1 %v1598_v29 }
 0x31a   : > { %1835 = vmatmul.mubr.bf16.gmra.mrb[24].mxu1 %v1597_v11 }
 0x31b   : > { %1842 = vmatprep.mubr.bf16.mxu1 %v1600_v4  ;;  %v1884_v4 = vld [vmem:[%s4434_s6 + $0x8] sm:$0xff] }
 0x322   : > { %1843 = vmatmul.mubr.bf16.gmra.mrb[28].mxu1 %v1599_v44 }
 0x323   : > { %1850 = vmatprep.mubr.bf16.mxu1 %v1602_v17 }
 0x32a   : > { %1851 = vmatmul.mubr.bf16.gmra.mrb[32].mxu1 %v1601_v3 }
 0x32b   : > { %1858 = vmatprep.mubr.bf16.mxu1 %v1604_v31 }
 0x332   : > { %1859 = vmatmul.mubr.bf16.gmra.mrb[36].mxu1 %v1603_v53 }
 0x333   : > { %1866 = vmatprep.mubr.bf16.mxu1 %v1606_v6 }
 0x33a   : > { %1867 = vmatmul.mubr.bf16.gmra.mrb[40].mxu1 %v1605_v21 }
 0x33b   : > { %1874 = vmatprep.mubr.bf16.mxu1 %v1608_v62 }
 0x342   : > { %1875 = vmatmul.mubr.bf16.gmra.mrb[44].mxu1 %v1607_v30 }
 0x343   : > { %2403 = vmatprep.mubr.bf16.mxu1 %v2503_v54 }
 0x398   : > { %v2373_v63 = vpop.f32.mrb[0].mxu1 }
 0x399   : > { %v1723_v40 = vpop.f32.mrb[1].mxu1 }
 0x39a   : > { %v2374_v0 = vpop.f32.mrb[2].mxu1 }
 0x39b   : > { %v1726_v51 = vpop.f32.mrb[3].mxu1 }
 0x3b5   : > { %v2377_v22 = vpop.f32.mrb[4].mxu1 }
 0x3b6   : > { %v1739_v61 = vpop.f32.mrb[5].mxu1 }
 0x3b7   : > { %v2378_v56 = vpop.f32.mrb[6].mxu1 }
 0x3b8   : > { %v1742_v18 = vpop.f32.mrb[7].mxu1 }
 0x3c5   : > { %v4234_v45 = vpop.f32.mrb[8].mxu1 }
 0x3c6   : > { %v1755_v12 = vpop.f32.mrb[9].mxu1 }
 0x3c7   : > { %v4236_v36 = vpop.f32.mrb[10].mxu1 }
 0x3c8   : > { %v4238_v5 = vpop.f32.mrb[11].mxu1 }
 0x3d5   : > { %v4240_v35 = vpop.f32.mrb[12].mxu1 }
 0x3d6   : > { %v4242_v57 = vpop.f32.mrb[13].mxu1 }
 0x3d7   : > { %v4244_v2 = vpop.f32.mrb[14].mxu1 }
 0x3d8   : > { %v4246_v29 = vpop.f32.mrb[15].mxu1 }
 0x3dd   : > { %v1820_v11 = vpop.f32.mrb[16].mxu1 }
 0x3de   : > { %v1821_v38 = vadd.f32 %v1820_v11, %v1723_v40  ;;  %v1822_v48 = vpop.f32.mrb[17].mxu1 }
 0x3df   : > { %v1823_v28 = vpop.f32.mrb[18].mxu1 }
 0x3e0   : > { %v1824_v44 = vadd.f32 %v1823_v28, %v1726_v51  ;;  %v1825_v17 = vpop.f32.mrb[19].mxu1  ;;  %v1899_v3 = vmul.f32 %v1883_v32, %v1821_v38  ;;  %v1893_v38 = vld [vmem:[%s4434_s6 + $0x50] sm:$0xff]  ;;  %v1894_v32 = vld [vmem:[%s4434_s6 + $0x58] sm:$0xff] }
 0x3e2   : > { %v1900_v31 = vmul.f32 %v1884_v4, %v1824_v44 }
 0x3e4   : > { %v1923_v53 = vpack.c.bf16 %v1900_v31, %v1899_v3 }
 0x3e5   : > { %v1828_v25 = vpop.f32.mrb[20].mxu1 }
 0x3e6   : > { %v1829_v24 = vadd.f32 %v2373_v63, %v1828_v25  ;;  %v1830_v1 = vpop.f32.mrb[21].mxu1  ;;  %2387 = vmatprep.subr.bf16.mxu1 %v1923_v53  ;;  %v1891_v63 = vld [vmem:[%s4434_s6 + $0x40] sm:$0xff] }
 0x3e7   : > { %v1831_v20 = vpop.f32.mrb[22].mxu1  ;;  %2388 = vmatpush3.bf16.xpose.msra.mxu1 %v1923_v53  ;;  %v1895_v53 = vld [vmem:[%s4434_s6 + $0x60] sm:$0xff] }
 0x3e8   : > { %v1832_v13 = vadd.f32 %v2374_v0, %v1831_v20  ;;  %v1833_v49 = vpop.f32.mrb[23].mxu1  ;;  %v1901_v10 = vmul.f32 %v1885_v37, %v1829_v24  ;;  %v1892_v0 = vld [vmem:[%s4434_s6 + $0x48] sm:$0xff] }
 0x3e9   : > { %v1896_v24 = vld [vmem:[%s4434_s6 + $0x68] sm:$0xff] }
 0x3ea   : > { %v1902_v8 = vmul.f32 %v1886_v34, %v1832_v13 }
 0x3ec   : > { %v1924_v60 = vpack.c.bf16 %v1902_v8, %v1901_v10  ;;  %v1897_v10 = vld [vmem:[%s4434_s6 + $0x70] sm:$0xff] }
 0x3ed   : > { %v1836_v41 = vpop.f32.mrb[24].mxu1 }
 0x3ee   : > { %v1837_v14 = vadd.f32 %v1836_v41, %v1739_v61  ;;  %v1838_v16 = vpop.f32.mrb[25].mxu1  ;;  %2389 = vmatprep.subr.bf16.mxu1 %v1924_v60 }
 0x3ef   : > { %v1839_v9 = vpop.f32.mrb[26].mxu1  ;;  %2390 = vmatpush3.bf16.xpose.msra.mxu1 %v1924_v60  ;;  %v1898_v60 = vld [vmem:[%s4434_s6 + $0x78] sm:$0xff] }
 0x3f0   : > { %v1840_v6 = vadd.f32 %v1839_v9, %v1742_v18  ;;  %v1841_v21 = vpop.f32.mrb[27].mxu1  ;;  %v1903_v15 = vmul.f32 %v1887_v46, %v1837_v14  ;;  %v2504_v9 = vld [vmem:[%s4432_s4 + $0x8] sm:$0xff]  }
 0x3f1   : > { %v2506_v21 = vld [vmem:[%s4432_s4 + $0x18] sm:$0xff]  }
 0x3f2   : > { %v1904_v26 = vmul.f32 %v1888_v33, %v1840_v6  ;;  %v2505_v33 = vld [vmem:[%s4432_s4 + $0x10] sm:$0xff]   ;;  %v4655_v6 = vld [vmem:[#allocation32_spill] sm:$0xff] }
 0x3f4   : > { %v1925_v19 = vpack.c.bf16 %v1904_v26, %v1903_v15  ;;  %v4657_v15 = vld [vmem:[#allocation33_spill] sm:$0xff]  ;;  %v4658_v26 = vld [vmem:[#allocation34_spill] sm:$0xff] }
 0x3f5   : > { %v1844_v23 = vpop.f32.mrb[28].mxu1 }
 0x3f6   : > { %v1845_v42 = vadd.f32 %v2377_v22, %v1844_v23  ;;  %v1846_v39 = vpop.f32.mrb[29].mxu1  ;;  %2391 = vmatprep.subr.bf16.mxu1 %v1925_v19  ;;  %v4660_v23 = vmov 0  }
 0x3f7   : > { %v1847_v52 = vpop.f32.mrb[30].mxu1  ;;  %2392 = vmatpush3.bf16.xpose.msra.mxu1 %v1925_v19  ;;  %v4659_v19 = vld [vmem:[#allocation36_spill] sm:$0xff]  ;;  %v4662_v39 = vld [vmem:[#allocation37_spill] sm:$0xff] }
 0x3f8   : > { %v1848_v27 = vadd.f32 %v2378_v56, %v1847_v52  ;;  %v1849_v55 = vpop.f32.mrb[31].mxu1  ;;  %v1905_v58 = vmul.f32 %v1889_v50, %v1845_v42  ;;  %v4661_v42 = vld [vmem:[#allocation35_spill] sm:$0xff]  ;;  %v4663_v50 = vld [vmem:[#allocation38_spill] sm:$0xff]  ;;  %v4664_v52 = vld [vmem:[#allocation40_spill] sm:$0xff] }
 0x3f9   : > { %v4667_v55 = vld [vmem:[#allocation28_spill] sm:$0xff] }
 0x3fa   : > { %v1906_v7 = vmul.f32 %v1890_v43, %v1848_v27  ;;  %v4665_v43 = vld [vmem:[#allocation39_spill] sm:$0xff]  ;;  %v4666_v27 = vld [vmem:[#allocation41_spill] sm:$0xff] }
 0x3fc   : > { %v1926_v47 = vpack.c.bf16 %v1906_v7, %v1905_v58  ;;  %v4668_v58 = vld [vmem:[#allocation26_spill] sm:$0xff]  ;;  %v4669_v7 = vld [vmem:[#allocation29_spill] sm:$0xff] }
 0x3fd   : > { %v1852_v59 = vpop.f32.mrb[32].mxu1 }
 0x3fe   : > { %v1853_v62 = vadd.f32 %v1852_v59, %v1755_v12  ;;  %v1854_v30 = vpop.f32.mrb[33].mxu1  ;;  %2393 = vmatprep.subr.bf16.mxu1 %v1926_v47  ;;  %v2041_v59 = vld [vmem:[%s4433_s5 + $0x8] sm:$0xff] }
 0x3ff   : > { %v1855_v40 = vpop.f32.mrb[34].mxu1  ;;  %2394 = vmatpush3.bf16.xpose.msra.mxu1 %v1926_v47  ;;  %v4670_v47 = vld [vmem:[#allocation27_spill] sm:$0xff]  ;;  %2055 = vperm.xlu1 %2478, %v2041_v59   ;;  %v2040_v30 = vld [vmem:[%s4433_s5] sm:$0xff] }
 0x400   : > { %v1856_v51 = vadd.f32 %v1855_v40, %v4238_v5  ;;  %v1857_v54 = vpop.f32.mrb[35].mxu1  ;;  %v1907_v22 = vmul.f32 %v1891_v63, %v1853_v62  ;;  %v2042_v62 = vld [vmem:[%s4433_s5 + $0x10] sm:$0xff]  ;;  %2050 = vperm.xlu0 %2477, %v2040_v30   ;;  %v2043_v63 = vld [vmem:[%s4433_s5 + $0x18] sm:$0xff]  ;;  %v2044_v40 = vld [vmem:[%s4433_s5 + $0x20] sm:$0xff] }
 0x401   : > { %v2047_v54 = vld [vmem:[%s4433_s5 + $0x38] sm:$0xff] }
 0x402   : > { %v1908_v61 = vmul.f32 %v1892_v0, %v1856_v51  ;;  %v2045_v0 = vld [vmem:[%s4433_s5 + $0x28] sm:$0xff]  ;;  %v2046_v51 = vld [vmem:[%s4433_s5 + $0x30] sm:$0xff] }
 0x403   : > { %2060 = vperm.xlu1 %2478, %v2042_v62  }
 0x404   : > { %v1927_v56 = vpack.c.bf16 %v1908_v61, %v1907_v22 }
 0x405   : > { %v1860_v18 = vpop.f32.mrb[36].mxu1 }
 0x406   : > { %v1861_v12 = vadd.f32 %v4234_v45, %v1860_v18  ;;  %v1862_v11 = vpop.f32.mrb[37].mxu1  ;;  %2395 = vmatprep.subr.bf16.mxu1 %v1927_v56 }
 0x407   : > { %v1863_v48 = vpop.f32.mrb[38].mxu1  ;;  %2396 = vmatpush3.bf16.xpose.msra.mxu1 %v1927_v56  ;;  %2065 = vperm.xlu1 %2478, %v2043_v63  }
 0x408   : > { %v1864_v5 = vadd.f32 %v4236_v36, %v1863_v48  ;;  %v1865_v28 = vpop.f32.mrb[39].mxu1  ;;  %v1909_v4 = vmul.f32 %v1893_v38, %v1861_v12 }
 0x40a   : > { %v1910_v44 = vmul.f32 %v1894_v32, %v1864_v5 }
 0x40b   : > { %2070 = vperm.xlu1 %2478, %v2044_v40  }
 0x40c   : > { %v1928_v17 = vpack.c.bf16 %v1910_v44, %v1909_v4 }
 0x40d   : > { %v1868_v3 = vpop.f32.mrb[40].mxu1 }
 0x40e   : > { %v1869_v45 = vadd.f32 %v1868_v3, %v4242_v57  ;;  %v1870_v31 = vpop.f32.mrb[41].mxu1  ;;  %2397 = vmatprep.subr.bf16.mxu1 %v1928_v17 }
 0x40f   : > { %v1871_v25 = vpop.f32.mrb[42].mxu1  ;;  %2398 = vmatpush3.bf16.xpose.msra.mxu1 %v1928_v17  ;;  %2075 = vperm.xlu1 %2478, %v2045_v0  }
 0x410   : > { %v1872_v36 = vadd.f32 %v1871_v25, %v4246_v29  ;;  %v1873_v1 = vpop.f32.mrb[43].mxu1  ;;  %v1911_v37 = vmul.f32 %v1895_v53, %v1869_v45 }
 0x412   : > { %v1912_v20 = vmul.f32 %v1896_v24, %v1872_v36 }
 0x413   : > { %2080 = vperm.xlu1 %2478, %v2046_v51  }
 0x414   : > { %v1929_v34 = vpack.c.bf16 %v1912_v20, %v1911_v37 }
 0x415   : > { %v1876_v13 = vpop.f32.mrb[44].mxu1 }
 0x416   : > { %v1877_v57 = vadd.f32 %v4240_v35, %v1876_v13  ;;  %v1878_v49 = vpop.f32.mrb[45].mxu1  ;;  %2399 = vmatprep.subr.bf16.mxu1 %v1929_v34  ;;  %v4654_v35 = vld [vmem:[#allocation30_spill] sm:$0xff] }
 0x417   : > { %v1879_v8 = vpop.f32.mrb[46].mxu1  ;;  %2400 = vmatpush3.bf16.xpose.msra.mxu1 %v1929_v34  ;;  %2085 = vperm.xlu1 %2478, %v2047_v54  }
 0x418   : > { %v1880_v29 = vadd.f32 %v4244_v2, %v1879_v8  ;;  %v1881_v41 = vpop.f32.mrb[47].mxu1  ;;  %v1913_v14 = vmul.f32 %v1897_v10, %v1877_v57  ;;  %v4656_v2 = vld [vmem:[#allocation31_spill] sm:$0xff] }
 0x41a   : > { %v1914_v16 = vmul.f32 %v1898_v60, %v1880_v29 }
 0x41c   : > { %v1930_v46 = vpack.c.bf16 %v1914_v16, %v1913_v14 }
 0x41e   : > { %2401 = vmatprep.subr.bf16.mxu1 %v1930_v46 }
 0x41f   : > { %2402 = vmatpush3.bf16.xpose.msra.mxu1 %v1930_v46 }
 0x420   : > { %2411 = vmatprep.subr.bf16.mxu1 %v4654_v35 }
 0x426   : > { %2404 = vmatmul.mubr.bf16.vlgmr.msra.gmra.mrb[48].mxu1 %v2504_v9 }
 0x427   : > { %2419 = vmatpush1.bf16.msra.mxu1 %v4655_v6  ;;  %2407 = vmatprep.mubr.bf16.mxu1 %v2505_v33 }
 0x428   : > { %2412 = vmatprep.subr.bf16.mxu1 %v4656_v2 }
 0x42b   : > { %2420 = vmatpush1.bf16.msra.mxu1 %v4657_v15 }
 0x42c   : > { %2413 = vmatprep.subr.bf16.mxu1 %v4658_v26 }
 0x42e   : > { %2408 = vmatmul.mubr.bf16.gmra.mrb[52].mxu1 %v2506_v21 }
 0x42f   : > { %2421 = vmatpush1.bf16.msra.mxu1 %v4659_v19  ;;  %2150 = vmatprep.mubr.bf16.mxu1 %v4660_v23 }
 0x430   : > { %2414 = vmatprep.subr.bf16.mxu1 %v4661_v42 }
 0x433   : > { %2422 = vmatpush1.bf16.msra.mxu1 %v4662_v39 }
 0x434   : > { %2415 = vmatprep.subr.bf16.mxu1 %v4663_v50 }
 0x437   : > { %2423 = vmatpush1.bf16.msra.mxu1 %v4664_v52 }
 0x438   : > { %2416 = vmatprep.subr.bf16.mxu1 %v4665_v43 }
 0x43b   : > { %2424 = vmatpush1.bf16.msra.mxu1 %v4666_v27 }
 0x43c   : > { %2417 = vmatprep.subr.bf16.mxu1 %v4667_v55 }
 0x43f   : > { %2425 = vmatpush1.bf16.msra.mxu1 %v4668_v58 }
 0x440   : > { %2418 = vmatprep.subr.bf16.mxu1 %v4669_v7 }
 0x443   : > { %2426 = vmatpush1.bf16.msra.mxu1 %v4670_v47 }
 0x47e   : > { %v2056_v44 = vpop.permute.xlu1 %2055 }
 0x47f   : > { %v2051_v53 = vpop.permute.xlu0 %2050 }
 0x482   : > { %v2061_v17 = vpop.permute.xlu1 %2060 }
 0x486   : > { %v2066_v3 = vpop.permute.xlu1 %2065 }
 0x48a   : > { %v2071_v45 = vpop.permute.xlu1 %2070 }
 0x48e   : > { %v2076_v31 = vpop.permute.xlu1 %2075 }
 0x492   : > { %v2081_v24 = vpop.permute.xlu1 %2080 }
 0x496   : > { %v2086_v49 = vpop.permute.xlu1 %2085 }
 0x4f9   : > { %v2405_v22 = vpop.f32.mrb[48].mxu1 }
 0x4fa   : > { %v1989_v61 = vpop.f32.mrb[49].mxu1 }
 0x4fb   : > { %v2406_v56 = vpop.f32.mrb[50].mxu1 }
 0x4fc   : > { %v2021_v18 = vpack.c.bf16 %v2406_v56, %v2405_v22  ;;  %v1992_v12 = vpop.f32.mrb[51].mxu1 }
 0x4fd   : > { %v2020_v11 = vpack.c.bf16 %v1992_v12, %v1989_v61 }
 0x4ff   : > { %2121 = vmatmul.mubr.bf16.vlgmr.msra.gmra.mrb[96].mxu0 %v2020_v11 }
 0x500   : > { %2130 = vmatprep.mubr.bf16.mxu0 %v4660_v23 }
 0x501   : > { %v2409_v38 = vpop.f32.mrb[52].mxu1 }
 0x502   : > { %v2005_v48 = vpop.f32.mrb[53].mxu1 }
 0x503   : > { %v2410_v32 = vpop.f32.mrb[54].mxu1 }
 0x504   : > { %v2023_v5 = vpack.c.bf16 %v2410_v32, %v2409_v38  ;;  %v2008_v28 = vpop.f32.mrb[55].mxu1 }
 0x505   : > { %v2022_v4 = vpack.c.bf16 %v2008_v28, %v2005_v48 }
 0x506   : > { %2151 = vmatmul.mubr.bf16.vlgmr.msra.gmra.mrb[56].mxu1 %v2023_v5 }
 0x507   : > { %2131 = vmatmul.mubr.bf16.gmra.mrb[100].mxu0 %v2021_v18 }
 0x508   : > { %2140 = vmatprep.mubr.bf16.mxu0 %v4660_v23 }
 0x50f   : > { %2141 = vmatmul.mubr.bf16.gmra.mrb[104].mxu0 %v2022_v4 }
 0x5d2   : > { %v2122_v25 = vpop.f32.mrb[96].mxu0 }
 0x5d3   : > { %v2123_v36 = vadd.f32 %v2122_v25, %v2051_v53  ;;  %v2124_v1 = vpop.f32.mrb[97].mxu0 }
 0x5d4   : > { %v2125_v37 = vadd.f32 %v2124_v1, %v2051_v53  ;;  %v2126_v20 = vpop.f32.mrb[98].mxu0 }
 0x5d5   : > { %2161 = vst [vmem:[%s4358_s9] sm:$0xff] %v2123_v36  ;;  %v2127_v34 = vadd.f32 %v2126_v20, %v2056_v44  ;;  %v2128_v13 = vpop.f32.mrb[99].mxu0 }
 0x5d6   : > { %2162 = vst [vmem:[%s4358_s9 + $0x8] sm:$0xff] %v2125_v37  ;;  %v2129_v57 = vadd.f32 %v2128_v13, %v2056_v44 }
 0x5d7   : > { %2163 = vst [vmem:[%s4358_s9 + $0x10] sm:$0xff] %v2127_v34 }
 0x5d8   : > { %2164 = vst [vmem:[%s4358_s9 + $0x18] sm:$0xff] %v2129_v57 }
 0x5d9   : > { %v2152_v10 = vpop.f32.mrb[56].mxu1 }
 0x5da   : > { %v2153_v8 = vadd.f32 %v2152_v10, %v2081_v24  ;;  %v2132_v60 = vpop.f32.mrb[100].mxu0  ;;  %v2154_v29 = vpop.f32.mrb[57].mxu1 }
 0x5db   : > { %v2133_v41 = vadd.f32 %v2132_v60, %v2061_v17  ;;  %v2155_v14 = vadd.f32 %v2154_v29, %v2081_v24  ;;  %v2134_v16 = vpop.f32.mrb[101].mxu0  ;;  %v2156_v46 = vpop.f32.mrb[58].mxu1 }
 0x5dc   : > { %2173 = vst [vmem:[%s4358_s9 + $0x60] sm:$0xff] %v2153_v8  ;;  %v2135_v35 = vadd.f32 %v2134_v16, %v2061_v17  ;;  %v2157_v9 = vadd.f32 %v2156_v46, %v2086_v49  ;;  %v2136_v33 = vpop.f32.mrb[102].mxu0  ;;  %v2158_v6 = vpop.f32.mrb[59].mxu1 }
 0x5dd   : > { %2165 = vst [vmem:[%s4358_s9 + $0x20] sm:$0xff] %v2133_v41  ;;  %2174 = vst [vmem:[%s4358_s9 + $0x68] sm:$0xff] %v2155_v14  ;;  %v2137_v2 = vadd.f32 %v2136_v33, %v2066_v3  ;;  %v2159_v21 = vadd.f32 %v2158_v6, %v2086_v49  ;;  %v2138_v15 = vpop.f32.mrb[103].mxu0 }
 0x5de   : > { %2166 = vst [vmem:[%s4358_s9 + $0x28] sm:$0xff] %v2135_v35  ;;  %2175 = vst [vmem:[%s4358_s9 + $0x70] sm:$0xff] %v2157_v9  ;;  %v2139_v26 = vadd.f32 %v2138_v15, %v2066_v3 }
 0x5df   : > { %2167 = vst [vmem:[%s4358_s9 + $0x30] sm:$0xff] %v2137_v2  ;;  %2176 = vst [vmem:[%s4358_s9 + $0x78] sm:$0xff] %v2159_v21 }
 0x5e0   : > { %2168 = vst [vmem:[%s4358_s9 + $0x38] sm:$0xff] %v2139_v26 }
 0x5e2   : > { %v2142_v19 = vpop.f32.mrb[104].mxu0 }
 0x5e3   : > { %v2143_v23 = vadd.f32 %v2142_v19, %v2071_v45  ;;  %v2144_v42 = vpop.f32.mrb[105].mxu0 }
 0x5e4   : > { %v2145_v39 = vadd.f32 %v2144_v42, %v2071_v45  ;;  %v2146_v50 = vpop.f32.mrb[106].mxu0 }
 0x5e5   : > { %2169 = vst [vmem:[%s4358_s9 + $0x40] sm:$0xff] %v2143_v23  ;;  %v2147_v52 = vadd.f32 %v2146_v50, %v2076_v31  ;;  %v2148_v43 = vpop.f32.mrb[107].mxu0 }
 0x5e6   : > { %2170 = vst [vmem:[%s4358_s9 + $0x48] sm:$0xff] %v2145_v39  ;;  %v2149_v27 = vadd.f32 %v2148_v43, %v2076_v31 }
 0x5e7   : > { %2171 = vst [vmem:[%s4358_s9 + $0x50] sm:$0xff] %v2147_v52 }
 0x5e8   : > { %2172 = vst [vmem:[%s4358_s9 + $0x58] sm:$0xff] %v2149_v27 }
 0x5e9   : > { %2742 = shalt.err (!%p2739_p3)
}
 0x5ea   : > { %s2743_s22 = scalar_lea.hbm %s4378_s17, 2048  ;;  %s2747_s8 = scalar_lea.hbm %s4435_s7, 4096 }
 0x5eb   : > { %p2744_p4 = scmp.ne.s32.totalorder %s4378_s17, %s2743_s22  ;;  %p2748_p9 = scmp.lt.u32.totalorder %s4378_s17, %s4435_s7 }
 0x5ec   : > { %p2749_p10 = scmp.lt.u32.totalorder %s2747_s8, %s2743_s22  ;;  %p2751_p12 = scmp.lt.u32.totalorder %s2743_s22, %s4378_s17 }
 0x5ed   : > { %p2745_p7 = pnand %p2744_p4, %p2875_p5 }
 0x5ee   : > { %p2750_p11 = por %p2749_p10, %p2748_p9 }
 0x5ef   : > { %p2746_p8 = pneg %p2745_p7 }
 0x5f0   : > { %p2752_p13 = por %p2751_p12, %p2750_p11 }
 0x5f2   : > { %p2753_p0 = pnand %p2752_p13, %p2746_p8 }
 0x5f4   : > { %2756 = shalt.err (!%p2753_p0)
}
 0x5f5   : > { %s2795_s15 = smov 256   ;;  %s2796_s16 = smov 16  }
 0x5f6   : > { %2435 = dma.vmem_to_hbm [thread:$0]  (%p2875_p5), %s4380_s14, 2048, %s4378_s17, %s4387_s28, %s2795_s15, %s2795_s15, %s2796_s16  }
 0x5f7 PF: > { %p2441_p1 = scmp.ge.s32.totalorder %s2791_s27, 2  ;;  %s2206_s18 = sand.u32 1, %s2779_s24  }
 0x5f8   : > { %s2207_s19 = scalar_lea.sflag [#allocation3], %s2206_s18 }
 0x5f9   : > { %p2438_p2 = pnand %p2441_p1, %p2879_p6 }
 0x5fb   : > { %2774 = dma.done.wait (!%p2438_p2), %s2207_s19, 2048  }
 0x5fc   : > { %2776 = vsyncadd (!%p2438_p2), %s2207_s19, 4294965248  ;;  %p17_p3 = scmp.ge.s32.totalorder %s2862_s30, 4   ;;  %s4671_s24 = smov %s2783_s25 }
 0x5fd   : > { %s4672_s25 = smov %s2787_s26  ;;  %s4673_s26 = smov %s2873_s10 }
 0x5fe   : > { %s4674_s27 = smov %s2862_s30  ;;  %19 = sbr.rel (!%p17_p3) target bundleno = 3 (0x3), region = 83 }
 0x605   :  { %2212 = vsyncpa [#allocation3], 1 }
 0x606   :  { %2214 = vsyncpa [#allocation3 + $0x1], 1 }

</bundles_post_ra>
